<compile_context>
chip_gen: v5e
topology: v5e:2x2
jax: 0.10.0
libtpu: 0.0.40
codegen_flags: <defaults>
</compile_context>

<pallas_src>
import jax
import jax.numpy as jnp
from jax import lax
from jax.experimental import pallas as pl
from jax.experimental.pallas import tpu as pltpu


def _round_up(x, m):
    return (x + m - 1) // m * m


# ----------------------------------------------------------------------------
# Kernel 1: fused input projection (one big matmul) + GRU recurrence.
# ----------------------------------------------------------------------------
def make_gru_kernel(T1, Bp, Hp):
    def gru_kernel(x_ref,        # (T1*Bp, Ep)   time-major, flattened
                   wih_ref,      # (Ep, 3*Hp)    fused [Wir|Wiz|Win] (pre-transposed)
                   whh_ref,      # (Hp, 3*Hp)    fused [Whr|Whz|Whn] (pre-transposed)
                   bi_ref,       # (1, 3*Hp)     [b_ir+b_hr | b_iz+b_hz | b_in]
                   bhn_ref,      # (1, Hp)       b_hn (kept separate: r * (gh_n + b_hn))
                   hid_ref,      # out: (T1*Bp, Hp)
                   gi_ref):      # scratch: (T1*Bp, 3*Hp) f32
        # ---- non-recurrent: input->gate projection for ALL steps at once ----
        gi_ref[...] = (jnp.dot(x_ref[...], wih_ref[...],
                               preferred_element_type=jnp.float32)
                       + bi_ref[...])

        # ---- recurrence: only h @ W_hh (one fused matmul) per step ----
        whh = whh_ref[...]                                       # hoisted weight load
        bhn_b = jnp.broadcast_to(bhn_ref[...], (Bp, Hp))         # hoisted broadcast
        h0 = jnp.zeros((Bp, Hp), jnp.float32)

        def step(t, h):
            row = pl.multiple_of(t * Bp, 8)
            gi = gi_ref[pl.ds(row, Bp), :]                       # (Bp, 3Hp)
            # single fused hidden->gate matmul on the serial critical path
            gh = jnp.dot(h, whh, preferred_element_type=jnp.float32)
            r = jax.nn.sigmoid(gi[:, 0:Hp] + gh[:, 0:Hp])
            z = jax.nn.sigmoid(gi[:, Hp:2 * Hp] + gh[:, Hp:2 * Hp])
            n = jnp.tanh(gi[:, 2 * Hp:3 * Hp] + r * (gh[:, 2 * Hp:3 * Hp] + bhn_b))
            h_new = (1.0 - z) * n + z * h
            hid_ref[pl.ds(row, Bp), :] = h_new.astype(hid_ref.dtype)
            return h_new

        # small static trip count -> fully unroll for cross-iteration scheduling
        lax.fori_loop(0, T1, step, h0, unroll=True)

    return gru_kernel


# ----------------------------------------------------------------------------
# Kernel 2: output Linear projection, tiled over the vocab dimension.
# ----------------------------------------------------------------------------
def linear_kernel(h_ref,     # (T1*Bp, Hp)
                  w_ref,     # (Hp, tV)
                  b_ref,     # (1, tV)
                  o_ref):    # (T1*Bp, tV)
    o_ref[...] = (jnp.dot(h_ref[...], w_ref[...],
                          preferred_element_type=jnp.float32)
                  + b_ref[...]).astype(o_ref.dtype)


# ----------------------------------------------------------------------------
# Wrapper
# ----------------------------------------------------------------------------
def decoder_rnn_forward(features, captions, params, *, v_tile=512):
    """features: (B, E) f32, captions: (B, T) int32 -> logits (B, T+1, V)."""
    B, E = features.shape
    T = captions.shape[1]
    T1 = T + 1
    H = params["gru_b_ih"].shape[0] // 3
    V = params["lin_w"].shape[0]

    Ep = _round_up(E, 128)                 # lane-aligned contraction dim
    Hp = _round_up(H, 128)                 # lane-aligned hidden / gate stride
    Bp = _round_up(B, 8)                   # sublane-aligned batch
    tv = min(v_tile, _round_up(V, 128))    # lane-dense vocab tile
    Vp = _round_up(V, tv)                  # tile-divisible vocab
    TB = T1 * Bp

    # --- plain-JAX glue: embedding gather, dropout (identity), concat, pad ---
    # TODO(synk): nn.Dropout(0.5) is stochastic in train mode; implemented as
    # identity (eval-mode semantics).
    emb = params["embed"][captions]                              # (B, T, E)
    x = jnp.concatenate([features[:, None, :], emb], axis=1)     # (B, T1, E)
    x = jnp.transpose(x, (1, 0, 2)).astype(jnp.float32)          # (T1, B, E)
    x = jnp.pad(x, ((0, 0), (0, Bp - B), (0, Ep - E)))           # (T1, Bp, Ep)
    x_flat = x.reshape(TB, Ep)

    # --- fuse + pad PyTorch GRU weights (3H, E)/(3H, H), gate order [r, z, n] ---
    W_ih, W_hh = params["gru_w_ih"], params["gru_w_hh"]
    b_ih, b_hh = params["gru_b_ih"], params["gru_b_hh"]

    wih_all = jnp.zeros((Ep, 3 * Hp), jnp.float32)
    whh_all = jnp.zeros((Hp, 3 * Hp), jnp.float32)
    for g in range(3):
        wih_all = wih_all.at[:E, g * Hp:g * Hp + H].set(W_ih[g * H:(g + 1) * H].T)
        whh_all = whh_all.at[:H, g * Hp:g * Hp + H].set(W_hh[g * H:(g + 1) * H].T)

    # pre-summed biases: b_r = b_ir + b_hr, b_z = b_iz + b_hz; n-gate input bias
    # goes into the batched input projection, b_hn stays separate (r multiplies it).
    bi_all = jnp.zeros((1, 3 * Hp), jnp.float32)
    bi_all = bi_all.at[0, 0:H].set(b_ih[0:H] + b_hh[0:H])
    bi_all = bi_all.at[0, Hp:Hp + H].set(b_ih[H:2 * H] + b_hh[H:2 * H])
    bi_all = bi_all.at[0, 2 * Hp:2 * Hp + H].set(b_ih[2 * H:3 * H])
    bhn = jnp.zeros((1, Hp), jnp.float32).at[0, 0:H].set(b_hh[2 * H:3 * H])

    wl = jnp.zeros((Hp, Vp), jnp.float32).at[:H, :V].set(params["lin_w"].T)
    bl = jnp.zeros((1, Vp), jnp.float32).at[0, :V].set(params["lin_b"])

    # --- Kernel 1: input projection + recurrence ---
    vmem = pl.BlockSpec(memory_space=pltpu.MemorySpace.VMEM)
    hid = pl.pallas_call(
        make_gru_kernel(T1, Bp, Hp),
        out_shape=jax.ShapeDtypeStruct((TB, Hp), jnp.float32),
        in_specs=[vmem] * 5,
        out_specs=vmem,
        scratch_shapes=[pltpu.VMEM((TB, 3 * Hp), jnp.float32)],
    )(x_flat, wih_all, whh_all, bi_all, bhn)

    # --- Kernel 2: output Linear, grid over V tiles (parallel => megacore) ---
    out_flat = pl.pallas_call(
        linear_kernel,
        out_shape=jax.ShapeDtypeStruct((TB, Vp), jnp.float32),
        grid=(Vp // tv,),
        in_specs=[pl.BlockSpec((TB, Hp), lambda j: (0, 0)),
                  pl.BlockSpec((Hp, tv), lambda j: (0, j)),
                  pl.BlockSpec((1, tv), lambda j: (0, j))],
        out_specs=pl.BlockSpec((TB, tv), lambda j: (0, j)),
        compiler_params=pltpu.CompilerParams(
            dimension_semantics=("parallel",)),
    )(hid, wl, bl)

    out = out_flat.reshape(T1, Bp, Vp)[:, :B, :V]                # strip padding
    return jnp.transpose(out, (1, 0, 2))                         # (B, T1, V)


# ----------------------------------------------------------------------------
# Pure-JAX reference (PyTorch GRU equations) for validation.
# ----------------------------------------------------------------------------
def decoder_rnn_reference(features, captions, params):
    H = params["gru_b_ih"].shape[0] // 3
    emb = params["embed"][captions]
    x = jnp.concatenate([features[:, None, :], emb], axis=1)
    Wih, Whh = params["gru_w_ih"], params["gru_w_hh"]
    bih, bhh = params["gru_b_ih"], params["gru_b_hh"]

    def cell(h, x_t):
        gi = x_t @ Wih.T + bih
        gh = h @ Whh.T + bhh
        r = jax.nn.sigmoid(gi[:, :H] + gh[:, :H])
        z = jax.nn.sigmoid(gi[:, H:2 * H] + gh[:, H:2 * H])
        n = jnp.tanh(gi[:, 2 * H:] + r * gh[:, 2 * H:])
        h_new = (1.0 - z) * n + z * h
        return h_new, h_new

    h0 = jnp.zeros((x.shape[0], H), jnp.float32)
    _, hs = lax.scan(cell, h0, jnp.transpose(x, (1, 0, 2)))
    hs = jnp.transpose(hs, (1, 0, 2))
    return hs @ params["lin_w"].T + params["lin_b"]


# ----------------------------------------------------------------------------
def init_params(key, vocab_size, embed_size, hidden_size):
    ks = jax.random.split(key, 7)
    s = 0.1
    return {
        "embed":    s * jax.random.normal(ks[0], (vocab_size, embed_size), jnp.float32),
        "gru_w_ih": s * jax.random.normal(ks[1], (3 * hidden_size, embed_size), jnp.float32),
        "gru_w_hh": s * jax.random.normal(ks[2], (3 * hidden_size, hidden_size), jnp.float32),
        "gru_b_ih": s * jax.random.normal(ks[3], (3 * hidden_size,), jnp.float32),
        "gru_b_hh": s * jax.random.normal(ks[4], (3 * hidden_size,), jnp.float32),
        "lin_w":    s * jax.random.normal(ks[5], (vocab_size, hidden_size), jnp.float32),
        "lin_b":    s * jax.random.normal(ks[6], (vocab_size,), jnp.float32),
    }


if __name__ == "__main__":
    B, T = 2, 8
    EMBED, HIDDEN, VOCAB = 32, 32, 64

    key = jax.random.PRNGKey(0)
    k_par, k_feat, k_cap = jax.random.split(key, 3)

    params = init_params(k_par, VOCAB, EMBED, HIDDEN)
    features = jax.random.normal(k_feat, (B, EMBED), jnp.float32)   # CNN encoder output
    captions = jax.random.randint(k_cap, (B, T), 0, VOCAB, jnp.int32)

    out = decoder_rnn_forward(features, captions, params)
    out = jax.block_until_ready(out)

    ref = decoder_rnn_reference(features, captions, params)
    assert out.shape == (B, T + 1, VOCAB), out.shape
    assert jnp.allclose(out, ref, atol=1e-4, rtol=1e-4), "mismatch vs reference"

    print("KERNEL_OK")
</pallas_src>

<mosaic_0001>
module attributes {stable_mosaic.version = 11 : i64} {
  func.func @gru_kernel(%arg0: memref<72x128xf32, #tpu.memory_space<vmem>>, %arg1: memref<128x384xf32, #tpu.memory_space<vmem>>, %arg2: memref<128x384xf32, #tpu.memory_space<vmem>>, %arg3: memref<1x384xf32, #tpu.memory_space<vmem>>, %arg4: memref<1x128xf32, #tpu.memory_space<vmem>>, %arg5: memref<72x128xf32, #tpu.memory_space<vmem>>, %arg6: memref<72x384xf32, #tpu.memory_space<vmem>>) attributes {dimension_semantics = [], scalar_prefetch = 0 : i64, scratch_operands = 1 : i64, tpu.core_type = #tpu.core_type<tc>} {
    %c0 = arith.constant 0 : index
    %c0_0 = arith.constant 0 : index
    %0 = vector.load %arg0[%c0, %c0_0] : memref<72x128xf32, #tpu.memory_space<vmem>>, vector<72x128xf32>
    %c0_1 = arith.constant 0 : index
    %c0_2 = arith.constant 0 : index
    %1 = vector.load %arg1[%c0_1, %c0_2] : memref<128x384xf32, #tpu.memory_space<vmem>>, vector<128x384xf32>
    %cst = arith.constant dense<0.000000e+00> : vector<72x384xf32>
    %2 = tpu.matmul %0, %1, %cst {dimension_numbers = #tpu.dot_dimension_numbers<[1], [0], [0], [1], [0, 0, 1, 1], [], []>} : vector<72x128xf32>, vector<128x384xf32>, vector<72x384xf32> -> vector<72x384xf32>
    %c0_3 = arith.constant 0 : index
    %c0_4 = arith.constant 0 : index
    %3 = vector.load %arg3[%c0_3, %c0_4] : memref<1x384xf32, #tpu.memory_space<vmem>>, vector<1x384xf32>
    %4 = vector.broadcast %3 : vector<1x384xf32> to vector<72x384xf32>
    %5 = arith.addf %2, %4 : vector<72x384xf32>
    %c0_5 = arith.constant 0 : index
    %c0_6 = arith.constant 0 : index
    %6 = vector.load %arg6[%c0_5, %c0_6] : memref<72x384xf32, #tpu.memory_space<vmem>>, vector<72x384xf32>
    tpu.vector_store %arg6[%c0_5, %c0_6], %5 {strides = array<i32>} : memref<72x384xf32, #tpu.memory_space<vmem>>, vector<72x384xf32>,
    %c0_7 = arith.constant 0 : index
    %c0_8 = arith.constant 0 : index
    %7 = vector.load %arg2[%c0_7, %c0_8] : memref<128x384xf32, #tpu.memory_space<vmem>>, vector<128x384xf32>
    %c0_9 = arith.constant 0 : index
    %c0_10 = arith.constant 0 : index
    %8 = vector.load %arg4[%c0_9, %c0_10] : memref<1x128xf32, #tpu.memory_space<vmem>>, vector<1x128xf32>
    %9 = vector.shape_cast %8 : vector<1x128xf32> to vector<1x128xf32>
    %10 = vector.broadcast %9 : vector<1x128xf32> to vector<8x128xf32>
    %cst_11 = arith.constant 0.000000e+00 : f32
    %11 = vector.broadcast %cst_11 : f32 to vector<8x128xf32>
    %c0_i32 = arith.constant 0 : i32
    %c8_i32 = arith.constant 8 : i32
    %12 = arith.muli %c0_i32, %c8_i32 : i32
    %13 = tpu.assume_multiple %12, 8 : i32
    %14 = arith.index_cast %13 : i32 to index
    %c0_12 = arith.constant 0 : index
    %15 = vector.load %arg6[%14, %c0_12] : memref<72x384xf32, #tpu.memory_space<vmem>>, vector<8x384xf32>
    %cst_13 = arith.constant dense<0.000000e+00> : vector<8x384xf32>
    %16 = tpu.matmul %11, %7, %cst_13 {dimension_numbers = #tpu.dot_dimension_numbers<[1], [0], [0], [1], [0, 0, 1, 1], [], []>} : vector<8x128xf32>, vector<128x384xf32>, vector<8x384xf32> -> vector<8x384xf32>
    %17 = vector.extract_strided_slice %15 {offsets = [0, 0], sizes = [8, 128], strides = [1, 1]} : vector<8x384xf32> to vector<8x128xf32>
    %18 = vector.extract_strided_slice %16 {offsets = [0, 0], sizes = [8, 128], strides = [1, 1]} : vector<8x384xf32> to vector<8x128xf32>
    %19 = arith.addf %17, %18 : vector<8x128xf32>
    %20 = arith.negf %19 : vector<8x128xf32>
    %21 = math.exp %20 : vector<8x128xf32>
    %cst_14 = arith.constant 1.000000e+00 : f32
    %22 = vector.broadcast %cst_14 : f32 to vector<8x128xf32>
    %23 = arith.addf %22, %21 : vector<8x128xf32>
    %24 = arith.divf %22, %23 : vector<8x128xf32>
    %25 = vector.extract_strided_slice %15 {offsets = [0, 128], sizes = [8, 128], strides = [1, 1]} : vector<8x384xf32> to vector<8x128xf32>
    %26 = vector.extract_strided_slice %16 {offsets = [0, 128], sizes = [8, 128], strides = [1, 1]} : vector<8x384xf32> to vector<8x128xf32>
    %27 = arith.addf %25, %26 : vector<8x128xf32>
    %28 = arith.negf %27 : vector<8x128xf32>
    %29 = math.exp %28 : vector<8x128xf32>
    %cst_15 = arith.constant 1.000000e+00 : f32
    %30 = vector.broadcast %cst_15 : f32 to vector<8x128xf32>
    %31 = arith.addf %30, %29 : vector<8x128xf32>
    %32 = arith.divf %30, %31 : vector<8x128xf32>
    %33 = vector.extract_strided_slice %15 {offsets = [0, 256], sizes = [8, 128], strides = [1, 1]} : vector<8x384xf32> to vector<8x128xf32>
    %34 = vector.extract_strided_slice %16 {offsets = [0, 256], sizes = [8, 128], strides = [1, 1]} : vector<8x384xf32> to vector<8x128xf32>
    %35 = arith.addf %34, %10 : vector<8x128xf32>
    %36 = arith.mulf %24, %35 : vector<8x128xf32>
    %37 = arith.addf %33, %36 : vector<8x128xf32>
    %38 = math.tanh %37 : vector<8x128xf32>
    %cst_16 = arith.constant 1.000000e+00 : f32
    %39 = vector.broadcast %cst_16 : f32 to vector<8x128xf32>
    %40 = arith.subf %39, %32 : vector<8x128xf32>
    %41 = arith.mulf %40, %38 : vector<8x128xf32>
    %42 = arith.mulf %32, %11 : vector<8x128xf32>
    %43 = arith.addf %41, %42 : vector<8x128xf32>
    %44 = arith.index_cast %13 : i32 to index
    %c0_17 = arith.constant 0 : index
    %45 = vector.load %arg5[%44, %c0_17] : memref<72x128xf32, #tpu.memory_space<vmem>>, vector<8x128xf32>
    tpu.vector_store %arg5[%44, %c0_17], %43 {strides = array<i32>} : memref<72x128xf32, #tpu.memory_space<vmem>>, vector<8x128xf32>,
    %c1_i32 = arith.constant 1 : i32
    %c8_i32_18 = arith.constant 8 : i32
    %46 = arith.muli %c1_i32, %c8_i32_18 : i32
    %47 = tpu.assume_multiple %46, 8 : i32
    %48 = arith.index_cast %47 : i32 to index
    %c0_19 = arith.constant 0 : index
    %49 = vector.load %arg6[%48, %c0_19] : memref<72x384xf32, #tpu.memory_space<vmem>>, vector<8x384xf32>
    %cst_20 = arith.constant dense<0.000000e+00> : vector<8x384xf32>
    %50 = tpu.matmul %43, %7, %cst_20 {dimension_numbers = #tpu.dot_dimension_numbers<[1], [0], [0], [1], [0, 0, 1, 1], [], []>} : vector<8x128xf32>, vector<128x384xf32>, vector<8x384xf32> -> vector<8x384xf32>
    %51 = vector.extract_strided_slice %49 {offsets = [0, 0], sizes = [8, 128], strides = [1, 1]} : vector<8x384xf32> to vector<8x128xf32>
    %52 = vector.extract_strided_slice %50 {offsets = [0, 0], sizes = [8, 128], strides = [1, 1]} : vector<8x384xf32> to vector<8x128xf32>
    %53 = arith.addf %51, %52 : vector<8x128xf32>
    %54 = arith.negf %53 : vector<8x128xf32>
    %55 = math.exp %54 : vector<8x128xf32>
    %cst_21 = arith.constant 1.000000e+00 : f32
    %56 = vector.broadcast %cst_21 : f32 to vector<8x128xf32>
    %57 = arith.addf %56, %55 : vector<8x128xf32>
    %58 = arith.divf %56, %57 : vector<8x128xf32>
    %59 = vector.extract_strided_slice %49 {offsets = [0, 128], sizes = [8, 128], strides = [1, 1]} : vector<8x384xf32> to vector<8x128xf32>
    %60 = vector.extract_strided_slice %50 {offsets = [0, 128], sizes = [8, 128], strides = [1, 1]} : vector<8x384xf32> to vector<8x128xf32>
    %61 = arith.addf %59, %60 : vector<8x128xf32>
    %62 = arith.negf %61 : vector<8x128xf32>
    %63 = math.exp %62 : vector<8x128xf32>
    %cst_22 = arith.constant 1.000000e+00 : f32
    %64 = vector.broadcast %cst_22 : f32 to vector<8x128xf32>
    %65 = arith.addf %64, %63 : vector<8x128xf32>
    %66 = arith.divf %64, %65 : vector<8x128xf32>
    %67 = vector.extract_strided_slice %49 {offsets = [0, 256], sizes = [8, 128], strides = [1, 1]} : vector<8x384xf32> to vector<8x128xf32>
    %68 = vector.extract_strided_slice %50 {offsets = [0, 256], sizes = [8, 128], strides = [1, 1]} : vector<8x384xf32> to vector<8x128xf32>
    %69 = arith.addf %68, %10 : vector<8x128xf32>
    %70 = arith.mulf %58, %69 : vector<8x128xf32>
    %71 = arith.addf %67, %70 : vector<8x128xf32>
    %72 = math.tanh %71 : vector<8x128xf32>
    %cst_23 = arith.constant 1.000000e+00 : f32
    %73 = vector.broadcast %cst_23 : f32 to vector<8x128xf32>
    %74 = arith.subf %73, %66 : vector<8x128xf32>
    %75 = arith.mulf %74, %72 : vector<8x128xf32>
    %76 = arith.mulf %66, %43 : vector<8x128xf32>
    %77 = arith.addf %75, %76 : vector<8x128xf32>
    %78 = arith.index_cast %47 : i32 to index
    %c0_24 = arith.constant 0 : index
    %79 = vector.load %arg5[%78, %c0_24] : memref<72x128xf32, #tpu.memory_space<vmem>>, vector<8x128xf32>
    tpu.vector_store %arg5[%78, %c0_24], %77 {strides = array<i32>} : memref<72x128xf32, #tpu.memory_space<vmem>>, vector<8x128xf32>,
    %c2_i32 = arith.constant 2 : i32
    %c8_i32_25 = arith.constant 8 : i32
    %80 = arith.muli %c2_i32, %c8_i32_25 : i32
    %81 = tpu.assume_multiple %80, 8 : i32
    %82 = arith.index_cast %81 : i32 to index
    %c0_26 = arith.constant 0 : index
    %83 = vector.load %arg6[%82, %c0_26] : memref<72x384xf32, #tpu.memory_space<vmem>>, vector<8x384xf32>
    %cst_27 = arith.constant dense<0.000000e+00> : vector<8x384xf32>
    %84 = tpu.matmul %77, %7, %cst_27 {dimension_numbers = #tpu.dot_dimension_numbers<[1], [0], [0], [1], [0, 0, 1, 1], [], []>} : vector<8x128xf32>, vector<128x384xf32>, vector<8x384xf32> -> vector<8x384xf32>
    %85 = vector.extract_strided_slice %83 {offsets = [0, 0], sizes = [8, 128], strides = [1, 1]} : vector<8x384xf32> to vector<8x128xf32>
    %86 = vector.extract_strided_slice %84 {offsets = [0, 0], sizes = [8, 128], strides = [1, 1]} : vector<8x384xf32> to vector<8x128xf32>
    %87 = arith.addf %85, %86 : vector<8x128xf32>
    %88 = arith.negf %87 : vector<8x128xf32>
    %89 = math.exp %88 : vector<8x128xf32>
    %cst_28 = arith.constant 1.000000e+00 : f32
    %90 = vector.broadcast %cst_28 : f32 to vector<8x128xf32>
    %91 = arith.addf %90, %89 : vector<8x128xf32>
    %92 = arith.divf %90, %91 : vector<8x128xf32>
    %93 = vector.extract_strided_slice %83 {offsets = [0, 128], sizes = [8, 128], strides = [1, 1]} : vector<8x384xf32> to vector<8x128xf32>
    %94 = vector.extract_strided_slice %84 {offsets = [0, 128], sizes = [8, 128], strides = [1, 1]} : vector<8x384xf32> to vector<8x128xf32>
    %95 = arith.addf %93, %94 : vector<8x128xf32>
    %96 = arith.negf %95 : vector<8x128xf32>
    %97 = math.exp %96 : vector<8x128xf32>
    %cst_29 = arith.constant 1.000000e+00 : f32
    %98 = vector.broadcast %cst_29 : f32 to vector<8x128xf32>
    %99 = arith.addf %98, %97 : vector<8x128xf32>
    %100 = arith.divf %98, %99 : vector<8x128xf32>
    %101 = vector.extract_strided_slice %83 {offsets = [0, 256], sizes = [8, 128], strides = [1, 1]} : vector<8x384xf32> to vector<8x128xf32>
    %102 = vector.extract_strided_slice %84 {offsets = [0, 256], sizes = [8, 128], strides = [1, 1]} : vector<8x384xf32> to vector<8x128xf32>
    %103 = arith.addf %102, %10 : vector<8x128xf32>
    %104 = arith.mulf %92, %103 : vector<8x128xf32>
    %105 = arith.addf %101, %104 : vector<8x128xf32>
    %106 = math.tanh %105 : vector<8x128xf32>
    %cst_30 = arith.constant 1.000000e+00 : f32
    %107 = vector.broadcast %cst_30 : f32 to vector<8x128xf32>
    %108 = arith.subf %107, %100 : vector<8x128xf32>
    %109 = arith.mulf %108, %106 : vector<8x128xf32>
    %110 = arith.mulf %100, %77 : vector<8x128xf32>
    %111 = arith.addf %109, %110 : vector<8x128xf32>
    %112 = arith.index_cast %81 : i32 to index
    %c0_31 = arith.constant 0 : index
    %113 = vector.load %arg5[%112, %c0_31] : memref<72x128xf32, #tpu.memory_space<vmem>>, vector<8x128xf32>
    tpu.vector_store %arg5[%112, %c0_31], %111 {strides = array<i32>} : memref<72x128xf32, #tpu.memory_space<vmem>>, vector<8x128xf32>,
    %c3_i32 = arith.constant 3 : i32
    %c8_i32_32 = arith.constant 8 : i32
    %114 = arith.muli %c3_i32, %c8_i32_32 : i32
    %115 = tpu.assume_multiple %114, 8 : i32
    %116 = arith.index_cast %115 : i32 to index
    %c0_33 = arith.constant 0 : index
    %117 = vector.load %arg6[%116, %c0_33] : memref<72x384xf32, #tpu.memory_space<vmem>>, vector<8x384xf32>
    %cst_34 = arith.constant dense<0.000000e+00> : vector<8x384xf32>
    %118 = tpu.matmul %111, %7, %cst_34 {dimension_numbers = #tpu.dot_dimension_numbers<[1], [0], [0], [1], [0, 0, 1, 1], [], []>} : vector<8x128xf32>, vector<128x384xf32>, vector<8x384xf32> -> vector<8x384xf32>
    %119 = vector.extract_strided_slice %117 {offsets = [0, 0], sizes = [8, 128], strides = [1, 1]} : vector<8x384xf32> to vector<8x128xf32>
    %120 = vector.extract_strided_slice %118 {offsets = [0, 0], sizes = [8, 128], strides = [1, 1]} : vector<8x384xf32> to vector<8x128xf32>
    %121 = arith.addf %119, %120 : vector<8x128xf32>
    %122 = arith.negf %121 : vector<8x128xf32>
    %123 = math.exp %122 : vector<8x128xf32>
    %cst_35 = arith.constant 1.000000e+00 : f32
    %124 = vector.broadcast %cst_35 : f32 to vector<8x128xf32>
    %125 = arith.addf %124, %123 : vector<8x128xf32>
    %126 = arith.divf %124, %125 : vector<8x128xf32>
    %127 = vector.extract_strided_slice %117 {offsets = [0, 128], sizes = [8, 128], strides = [1, 1]} : vector<8x384xf32> to vector<8x128xf32>
    %128 = vector.extract_strided_slice %118 {offsets = [0, 128], sizes = [8, 128], strides = [1, 1]} : vector<8x384xf32> to vector<8x128xf32>
    %129 = arith.addf %127, %128 : vector<8x128xf32>
    %130 = arith.negf %129 : vector<8x128xf32>
    %131 = math.exp %130 : vector<8x128xf32>
    %cst_36 = arith.constant 1.000000e+00 : f32
    %132 = vector.broadcast %cst_36 : f32 to vector<8x128xf32>
    %133 = arith.addf %132, %131 : vector<8x128xf32>
    %134 = arith.divf %132, %133 : vector<8x128xf32>
    %135 = vector.extract_strided_slice %117 {offsets = [0, 256], sizes = [8, 128], strides = [1, 1]} : vector<8x384xf32> to vector<8x128xf32>
    %136 = vector.extract_strided_slice %118 {offsets = [0, 256], sizes = [8, 128], strides = [1, 1]} : vector<8x384xf32> to vector<8x128xf32>
    %137 = arith.addf %136, %10 : vector<8x128xf32>
    %138 = arith.mulf %126, %137 : vector<8x128xf32>
    %139 = arith.addf %135, %138 : vector<8x128xf32>
    %140 = math.tanh %139 : vector<8x128xf32>
    %cst_37 = arith.constant 1.000000e+00 : f32
    %141 = vector.broadcast %cst_37 : f32 to vector<8x128xf32>
    %142 = arith.subf %141, %134 : vector<8x128xf32>
    %143 = arith.mulf %142, %140 : vector<8x128xf32>
    %144 = arith.mulf %134, %111 : vector<8x128xf32>
    %145 = arith.addf %143, %144 : vector<8x128xf32>
    %146 = arith.index_cast %115 : i32 to index
    %c0_38 = arith.constant 0 : index
    %147 = vector.load %arg5[%146, %c0_38] : memref<72x128xf32, #tpu.memory_space<vmem>>, vector<8x128xf32>
    tpu.vector_store %arg5[%146, %c0_38], %145 {strides = array<i32>} : memref<72x128xf32, #tpu.memory_space<vmem>>, vector<8x128xf32>,
    %c4_i32 = arith.constant 4 : i32
    %c8_i32_39 = arith.constant 8 : i32
    %148 = arith.muli %c4_i32, %c8_i32_39 : i32
    %149 = tpu.assume_multiple %148, 8 : i32
    %150 = arith.index_cast %149 : i32 to index
    %c0_40 = arith.constant 0 : index
    %151 = vector.load %arg6[%150, %c0_40] : memref<72x384xf32, #tpu.memory_space<vmem>>, vector<8x384xf32>
    %cst_41 = arith.constant dense<0.000000e+00> : vector<8x384xf32>
    %152 = tpu.matmul %145, %7, %cst_41 {dimension_numbers = #tpu.dot_dimension_numbers<[1], [0], [0], [1], [0, 0, 1, 1], [], []>} : vector<8x128xf32>, vector<128x384xf32>, vector<8x384xf32> -> vector<8x384xf32>
    %153 = vector.extract_strided_slice %151 {offsets = [0, 0], sizes = [8, 128], strides = [1, 1]} : vector<8x384xf32> to vector<8x128xf32>
    %154 = vector.extract_strided_slice %152 {offsets = [0, 0], sizes = [8, 128], strides = [1, 1]} : vector<8x384xf32> to vector<8x128xf32>
    %155 = arith.addf %153, %154 : vector<8x128xf32>
    %156 = arith.negf %155 : vector<8x128xf32>
    %157 = math.exp %156 : vector<8x128xf32>
    %cst_42 = arith.constant 1.000000e+00 : f32
    %158 = vector.broadcast %cst_42 : f32 to vector<8x128xf32>
    %159 = arith.addf %158, %157 : vector<8x128xf32>
    %160 = arith.divf %158, %159 : vector<8x128xf32>
    %161 = vector.extract_strided_slice %151 {offsets = [0, 128], sizes = [8, 128], strides = [1, 1]} : vector<8x384xf32> to vector<8x128xf32>
    %162 = vector.extract_strided_slice %152 {offsets = [0, 128], sizes = [8, 128], strides = [1, 1]} : vector<8x384xf32> to vector<8x128xf32>
    %163 = arith.addf %161, %162 : vector<8x128xf32>
    %164 = arith.negf %163 : vector<8x128xf32>
    %165 = math.exp %164 : vector<8x128xf32>
    %cst_43 = arith.constant 1.000000e+00 : f32
    %166 = vector.broadcast %cst_43 : f32 to vector<8x128xf32>
    %167 = arith.addf %166, %165 : vector<8x128xf32>
    %168 = arith.divf %166, %167 : vector<8x128xf32>
    %169 = vector.extract_strided_slice %151 {offsets = [0, 256], sizes = [8, 128], strides = [1, 1]} : vector<8x384xf32> to vector<8x128xf32>
    %170 = vector.extract_strided_slice %152 {offsets = [0, 256], sizes = [8, 128], strides = [1, 1]} : vector<8x384xf32> to vector<8x128xf32>
    %171 = arith.addf %170, %10 : vector<8x128xf32>
    %172 = arith.mulf %160, %171 : vector<8x128xf32>
    %173 = arith.addf %169, %172 : vector<8x128xf32>
    %174 = math.tanh %173 : vector<8x128xf32>
    %cst_44 = arith.constant 1.000000e+00 : f32
    %175 = vector.broadcast %cst_44 : f32 to vector<8x128xf32>
    %176 = arith.subf %175, %168 : vector<8x128xf32>
    %177 = arith.mulf %176, %174 : vector<8x128xf32>
    %178 = arith.mulf %168, %145 : vector<8x128xf32>
    %179 = arith.addf %177, %178 : vector<8x128xf32>
    %180 = arith.index_cast %149 : i32 to index
    %c0_45 = arith.constant 0 : index
    %181 = vector.load %arg5[%180, %c0_45] : memref<72x128xf32, #tpu.memory_space<vmem>>, vector<8x128xf32>
    tpu.vector_store %arg5[%180, %c0_45], %179 {strides = array<i32>} : memref<72x128xf32, #tpu.memory_space<vmem>>, vector<8x128xf32>,
    %c5_i32 = arith.constant 5 : i32
    %c8_i32_46 = arith.constant 8 : i32
    %182 = arith.muli %c5_i32, %c8_i32_46 : i32
    %183 = tpu.assume_multiple %182, 8 : i32
    %184 = arith.index_cast %183 : i32 to index
    %c0_47 = arith.constant 0 : index
    %185 = vector.load %arg6[%184, %c0_47] : memref<72x384xf32, #tpu.memory_space<vmem>>, vector<8x384xf32>
    %cst_48 = arith.constant dense<0.000000e+00> : vector<8x384xf32>
    %186 = tpu.matmul %179, %7, %cst_48 {dimension_numbers = #tpu.dot_dimension_numbers<[1], [0], [0], [1], [0, 0, 1, 1], [], []>} : vector<8x128xf32>, vector<128x384xf32>, vector<8x384xf32> -> vector<8x384xf32>
    %187 = vector.extract_strided_slice %185 {offsets = [0, 0], sizes = [8, 128], strides = [1, 1]} : vector<8x384xf32> to vector<8x128xf32>
    %188 = vector.extract_strided_slice %186 {offsets = [0, 0], sizes = [8, 128], strides = [1, 1]} : vector<8x384xf32> to vector<8x128xf32>
    %189 = arith.addf %187, %188 : vector<8x128xf32>
    %190 = arith.negf %189 : vector<8x128xf32>
    %191 = math.exp %190 : vector<8x128xf32>
    %cst_49 = arith.constant 1.000000e+00 : f32
    %192 = vector.broadcast %cst_49 : f32 to vector<8x128xf32>
    %193 = arith.addf %192, %191 : vector<8x128xf32>
    %194 = arith.divf %192, %193 : vector<8x128xf32>
    %195 = vector.extract_strided_slice %185 {offsets = [0, 128], sizes = [8, 128], strides = [1, 1]} : vector<8x384xf32> to vector<8x128xf32>
    %196 = vector.extract_strided_slice %186 {offsets = [0, 128], sizes = [8, 128], strides = [1, 1]} : vector<8x384xf32> to vector<8x128xf32>
    %197 = arith.addf %195, %196 : vector<8x128xf32>
    %198 = arith.negf %197 : vector<8x128xf32>
    %199 = math.exp %198 : vector<8x128xf32>
    %cst_50 = arith.constant 1.000000e+00 : f32
    %200 = vector.broadcast %cst_50 : f32 to vector<8x128xf32>
    %201 = arith.addf %200, %199 : vector<8x128xf32>
    %202 = arith.divf %200, %201 : vector<8x128xf32>
    %203 = vector.extract_strided_slice %185 {offsets = [0, 256], sizes = [8, 128], strides = [1, 1]} : vector<8x384xf32> to vector<8x128xf32>
    %204 = vector.extract_strided_slice %186 {offsets = [0, 256], sizes = [8, 128], strides = [1, 1]} : vector<8x384xf32> to vector<8x128xf32>
    %205 = arith.addf %204, %10 : vector<8x128xf32>
    %206 = arith.mulf %194, %205 : vector<8x128xf32>
    %207 = arith.addf %203, %206 : vector<8x128xf32>
    %208 = math.tanh %207 : vector<8x128xf32>
    %cst_51 = arith.constant 1.000000e+00 : f32
    %209 = vector.broadcast %cst_51 : f32 to vector<8x128xf32>
    %210 = arith.subf %209, %202 : vector<8x128xf32>
    %211 = arith.mulf %210, %208 : vector<8x128xf32>
    %212 = arith.mulf %202, %179 : vector<8x128xf32>
    %213 = arith.addf %211, %212 : vector<8x128xf32>
    %214 = arith.index_cast %183 : i32 to index
    %c0_52 = arith.constant 0 : index
    %215 = vector.load %arg5[%214, %c0_52] : memref<72x128xf32, #tpu.memory_space<vmem>>, vector<8x128xf32>
    tpu.vector_store %arg5[%214, %c0_52], %213 {strides = array<i32>} : memref<72x128xf32, #tpu.memory_space<vmem>>, vector<8x128xf32>,
    %c6_i32 = arith.constant 6 : i32
    %c8_i32_53 = arith.constant 8 : i32
    %216 = arith.muli %c6_i32, %c8_i32_53 : i32
    %217 = tpu.assume_multiple %216, 8 : i32
    %218 = arith.index_cast %217 : i32 to index
    %c0_54 = arith.constant 0 : index
    %219 = vector.load %arg6[%218, %c0_54] : memref<72x384xf32, #tpu.memory_space<vmem>>, vector<8x384xf32>
    %cst_55 = arith.constant dense<0.000000e+00> : vector<8x384xf32>
    %220 = tpu.matmul %213, %7, %cst_55 {dimension_numbers = #tpu.dot_dimension_numbers<[1], [0], [0], [1], [0, 0, 1, 1], [], []>} : vector<8x128xf32>, vector<128x384xf32>, vector<8x384xf32> -> vector<8x384xf32>
    %221 = vector.extract_strided_slice %219 {offsets = [0, 0], sizes = [8, 128], strides = [1, 1]} : vector<8x384xf32> to vector<8x128xf32>
    %222 = vector.extract_strided_slice %220 {offsets = [0, 0], sizes = [8, 128], strides = [1, 1]} : vector<8x384xf32> to vector<8x128xf32>
    %223 = arith.addf %221, %222 : vector<8x128xf32>
    %224 = arith.negf %223 : vector<8x128xf32>
    %225 = math.exp %224 : vector<8x128xf32>
    %cst_56 = arith.constant 1.000000e+00 : f32
    %226 = vector.broadcast %cst_56 : f32 to vector<8x128xf32>
    %227 = arith.addf %226, %225 : vector<8x128xf32>
    %228 = arith.divf %226, %227 : vector<8x128xf32>
    %229 = vector.extract_strided_slice %219 {offsets = [0, 128], sizes = [8, 128], strides = [1, 1]} : vector<8x384xf32> to vector<8x128xf32>
    %230 = vector.extract_strided_slice %220 {offsets = [0, 128], sizes = [8, 128], strides = [1, 1]} : vector<8x384xf32> to vector<8x128xf32>
    %231 = arith.addf %229, %230 : vector<8x128xf32>
    %232 = arith.negf %231 : vector<8x128xf32>
    %233 = math.exp %232 : vector<8x128xf32>
    %cst_57 = arith.constant 1.000000e+00 : f32
    %234 = vector.broadcast %cst_57 : f32 to vector<8x128xf32>
    %235 = arith.addf %234, %233 : vector<8x128xf32>
    %236 = arith.divf %234, %235 : vector<8x128xf32>
    %237 = vector.extract_strided_slice %219 {offsets = [0, 256], sizes = [8, 128], strides = [1, 1]} : vector<8x384xf32> to vector<8x128xf32>
    %238 = vector.extract_strided_slice %220 {offsets = [0, 256], sizes = [8, 128], strides = [1, 1]} : vector<8x384xf32> to vector<8x128xf32>
    %239 = arith.addf %238, %10 : vector<8x128xf32>
    %240 = arith.mulf %228, %239 : vector<8x128xf32>
    %241 = arith.addf %237, %240 : vector<8x128xf32>
    %242 = math.tanh %241 : vector<8x128xf32>
    %cst_58 = arith.constant 1.000000e+00 : f32
    %243 = vector.broadcast %cst_58 : f32 to vector<8x128xf32>
    %244 = arith.subf %243, %236 : vector<8x128xf32>
    %245 = arith.mulf %244, %242 : vector<8x128xf32>
    %246 = arith.mulf %236, %213 : vector<8x128xf32>
    %247 = arith.addf %245, %246 : vector<8x128xf32>
    %248 = arith.index_cast %217 : i32 to index
    %c0_59 = arith.constant 0 : index
    %249 = vector.load %arg5[%248, %c0_59] : memref<72x128xf32, #tpu.memory_space<vmem>>, vector<8x128xf32>
    tpu.vector_store %arg5[%248, %c0_59], %247 {strides = array<i32>} : memref<72x128xf32, #tpu.memory_space<vmem>>, vector<8x128xf32>,
    %c7_i32 = arith.constant 7 : i32
    %c8_i32_60 = arith.constant 8 : i32
    %250 = arith.muli %c7_i32, %c8_i32_60 : i32
    %251 = tpu.assume_multiple %250, 8 : i32
    %252 = arith.index_cast %251 : i32 to index
    %c0_61 = arith.constant 0 : index
    %253 = vector.load %arg6[%252, %c0_61] : memref<72x384xf32, #tpu.memory_space<vmem>>, vector<8x384xf32>
    %cst_62 = arith.constant dense<0.000000e+00> : vector<8x384xf32>
    %254 = tpu.matmul %247, %7, %cst_62 {dimension_numbers = #tpu.dot_dimension_numbers<[1], [0], [0], [1], [0, 0, 1, 1], [], []>} : vector<8x128xf32>, vector<128x384xf32>, vector<8x384xf32> -> vector<8x384xf32>
    %255 = vector.extract_strided_slice %253 {offsets = [0, 0], sizes = [8, 128], strides = [1, 1]} : vector<8x384xf32> to vector<8x128xf32>
    %256 = vector.extract_strided_slice %254 {offsets = [0, 0], sizes = [8, 128], strides = [1, 1]} : vector<8x384xf32> to vector<8x128xf32>
    %257 = arith.addf %255, %256 : vector<8x128xf32>
    %258 = arith.negf %257 : vector<8x128xf32>
    %259 = math.exp %258 : vector<8x128xf32>
    %cst_63 = arith.constant 1.000000e+00 : f32
    %260 = vector.broadcast %cst_63 : f32 to vector<8x128xf32>
    %261 = arith.addf %260, %259 : vector<8x128xf32>
    %262 = arith.divf %260, %261 : vector<8x128xf32>
    %263 = vector.extract_strided_slice %253 {offsets = [0, 128], sizes = [8, 128], strides = [1, 1]} : vector<8x384xf32> to vector<8x128xf32>
    %264 = vector.extract_strided_slice %254 {offsets = [0, 128], sizes = [8, 128], strides = [1, 1]} : vector<8x384xf32> to vector<8x128xf32>
    %265 = arith.addf %263, %264 : vector<8x128xf32>
    %266 = arith.negf %265 : vector<8x128xf32>
    %267 = math.exp %266 : vector<8x128xf32>
    %cst_64 = arith.constant 1.000000e+00 : f32
    %268 = vector.broadcast %cst_64 : f32 to vector<8x128xf32>
    %269 = arith.addf %268, %267 : vector<8x128xf32>
    %270 = arith.divf %268, %269 : vector<8x128xf32>
    %271 = vector.extract_strided_slice %253 {offsets = [0, 256], sizes = [8, 128], strides = [1, 1]} : vector<8x384xf32> to vector<8x128xf32>
    %272 = vector.extract_strided_slice %254 {offsets = [0, 256], sizes = [8, 128], strides = [1, 1]} : vector<8x384xf32> to vector<8x128xf32>
    %273 = arith.addf %272, %10 : vector<8x128xf32>
    %274 = arith.mulf %262, %273 : vector<8x128xf32>
    %275 = arith.addf %271, %274 : vector<8x128xf32>
    %276 = math.tanh %275 : vector<8x128xf32>
    %cst_65 = arith.constant 1.000000e+00 : f32
    %277 = vector.broadcast %cst_65 : f32 to vector<8x128xf32>
    %278 = arith.subf %277, %270 : vector<8x128xf32>
    %279 = arith.mulf %278, %276 : vector<8x128xf32>
    %280 = arith.mulf %270, %247 : vector<8x128xf32>
    %281 = arith.addf %279, %280 : vector<8x128xf32>
    %282 = arith.index_cast %251 : i32 to index
    %c0_66 = arith.constant 0 : index
    %283 = vector.load %arg5[%282, %c0_66] : memref<72x128xf32, #tpu.memory_space<vmem>>, vector<8x128xf32>
    tpu.vector_store %arg5[%282, %c0_66], %281 {strides = array<i32>} : memref<72x128xf32, #tpu.memory_space<vmem>>, vector<8x128xf32>,
    %c8_i32_67 = arith.constant 8 : i32
    %c8_i32_68 = arith.constant 8 : i32
    %284 = arith.muli %c8_i32_67, %c8_i32_68 : i32
    %285 = tpu.assume_multiple %284, 8 : i32
    %286 = arith.index_cast %285 : i32 to index
    %c0_69 = arith.constant 0 : index
    %287 = vector.load %arg6[%286, %c0_69] : memref<72x384xf32, #tpu.memory_space<vmem>>, vector<8x384xf32>
    %cst_70 = arith.constant dense<0.000000e+00> : vector<8x384xf32>
    %288 = tpu.matmul %281, %7, %cst_70 {dimension_numbers = #tpu.dot_dimension_numbers<[1], [0], [0], [1], [0, 0, 1, 1], [], []>} : vector<8x128xf32>, vector<128x384xf32>, vector<8x384xf32> -> vector<8x384xf32>
    %289 = vector.extract_strided_slice %287 {offsets = [0, 0], sizes = [8, 128], strides = [1, 1]} : vector<8x384xf32> to vector<8x128xf32>
    %290 = vector.extract_strided_slice %288 {offsets = [0, 0], sizes = [8, 128], strides = [1, 1]} : vector<8x384xf32> to vector<8x128xf32>
    %291 = arith.addf %289, %290 : vector<8x128xf32>
    %292 = arith.negf %291 : vector<8x128xf32>
    %293 = math.exp %292 : vector<8x128xf32>
    %cst_71 = arith.constant 1.000000e+00 : f32
    %294 = vector.broadcast %cst_71 : f32 to vector<8x128xf32>
    %295 = arith.addf %294, %293 : vector<8x128xf32>
    %296 = arith.divf %294, %295 : vector<8x128xf32>
    %297 = vector.extract_strided_slice %287 {offsets = [0, 128], sizes = [8, 128], strides = [1, 1]} : vector<8x384xf32> to vector<8x128xf32>
    %298 = vector.extract_strided_slice %288 {offsets = [0, 128], sizes = [8, 128], strides = [1, 1]} : vector<8x384xf32> to vector<8x128xf32>
    %299 = arith.addf %297, %298 : vector<8x128xf32>
    %300 = arith.negf %299 : vector<8x128xf32>
    %301 = math.exp %300 : vector<8x128xf32>
    %cst_72 = arith.constant 1.000000e+00 : f32
    %302 = vector.broadcast %cst_72 : f32 to vector<8x128xf32>
    %303 = arith.addf %302, %301 : vector<8x128xf32>
    %304 = arith.divf %302, %303 : vector<8x128xf32>
    %305 = vector.extract_strided_slice %287 {offsets = [0, 256], sizes = [8, 128], strides = [1, 1]} : vector<8x384xf32> to vector<8x128xf32>
    %306 = vector.extract_strided_slice %288 {offsets = [0, 256], sizes = [8, 128], strides = [1, 1]} : vector<8x384xf32> to vector<8x128xf32>
    %307 = arith.addf %306, %10 : vector<8x128xf32>
    %308 = arith.mulf %296, %307 : vector<8x128xf32>
    %309 = arith.addf %305, %308 : vector<8x128xf32>
    %310 = math.tanh %309 : vector<8x128xf32>
    %cst_73 = arith.constant 1.000000e+00 : f32
    %311 = vector.broadcast %cst_73 : f32 to vector<8x128xf32>
    %312 = arith.subf %311, %304 : vector<8x128xf32>
    %313 = arith.mulf %312, %310 : vector<8x128xf32>
    %314 = arith.mulf %304, %281 : vector<8x128xf32>
    %315 = arith.addf %313, %314 : vector<8x128xf32>
    %316 = arith.index_cast %285 : i32 to index
    %c0_74 = arith.constant 0 : index
    %317 = vector.load %arg5[%316, %c0_74] : memref<72x128xf32, #tpu.memory_space<vmem>>, vector<8x128xf32>
    tpu.vector_store %arg5[%316, %c0_74], %315 {strides = array<i32>} : memref<72x128xf32, #tpu.memory_space<vmem>>, vector<8x128xf32>,
    %c9_i32 = arith.constant 9 : i32
    return
  }
}

</mosaic_0001>

<bundles_post_ra>
// kernel: tpu_custom_call.1
= control target key start
LH: loop header
LB: loop body
LE: loop exit
PB: predicated region body
PF: predicated region fallthrough
CT: control target
= control target key end

     0   :  { %10 = vsyncpa [#allocation4], 0  ;;  %s2576_s0 = inlined_call_operand.hbm [shape: f32[72,128], index: 0, kind: input, shape index: {}]   ;;  %s2577_s1 = inlined_call_operand.hbm [shape: f32[128,384], index: 1, kind: input, shape index: {}]   ;;  %s2578_s2 = inlined_call_operand.hbm [shape: f32[128,384], index: 2, kind: input, shape index: {}]   ;;  %s2579_s3 = inlined_call_operand.hbm [shape: f32[1,384], index: 3, kind: input, shape index: {}]   ;;  %s2580_s4 = inlined_call_operand.vmem [shape: f32[1,128], index: 4, kind: input, shape index: {}]   ;;  %s2581_s5 = inlined_call_operand.hbm [shape: f32[72,128], index: 5, kind: output, shape index: {}]  }
   0x1   :  { %11 = vsyncpa [#allocation7], 0 }
   0x2   :  { %12 = vsyncpa [#allocation10], 0  ;;  %s31_s20 = sshll.u32 %s2577_s1, 4  ;;  %s32_s20 = int_to_ptr.hbm [resolvable:$true] %s31_s20 }
   0x3   :  { %13 = vsyncpa [#allocation5], 0  ;;  %s1726_s21 = smov [#allocation6]   ;;  %s18_s25 = sshll.u32 %s2576_s0, 4  ;;  %s19_s25 = int_to_ptr.hbm [resolvable:$true] %s18_s25 }
   0x4   :  { %s33_s22 = sshll.u32 %s1726_s21, 4  ;;  %s1727_s26 = smov 384   ;;  %s34_s22 = int_to_ptr.vmem [resolvable:$true] %s33_s22 }
   0x5   :  { %s1728_s27 = smov 24   ;;  %s1729_s28 = smov [#allocation3]  }
   0x6   :  { %39 = dma.hbm_to_vmem [thread:$0]  %s32_s20, 6144, %s34_s22, [#allocation7], %s1727_s26, %s1727_s26, %s1728_s27  }
   0x7   :  { %s20_s29 = sshll.u32 %s1729_s28, 4  ;;  %s1730_s30 = smov 128   ;;  %s21_s29 = int_to_ptr.vmem [resolvable:$true] %s20_s29 }
   0x8   :  { %s1731_s6 = smov 8   ;;  %s44_s8 = sshll.u32 %s2578_s2, 4  ;;  %s45_s8 = int_to_ptr.hbm [resolvable:$true] %s44_s8 }
   0x9   :  { %26 = dma.hbm_to_vmem [thread:$0]  %s19_s25, 1152, %s21_s29, [#allocation4], %s1730_s30, %s1730_s30, %s1731_s6  }
   0xa   :  { %s1732_s9 = smov [#allocation8]   ;;  %s58_s12 = sshll.u32 %s2579_s3, 4  ;;  %s59_s12 = int_to_ptr.hbm [resolvable:$true] %s58_s12 }
   0xb   :  { %s46_s0 = sshll.u32 %s1732_s9, 4  ;;  %s1733_s13 = smov [#allocation9]   ;;  %s47_s0 = int_to_ptr.vmem [resolvable:$true] %s46_s0 }
   0xc   :  { %52 = dma.hbm_to_vmem [thread:$0]  %s45_s8, 6144, %s47_s0, [#allocation7], %s1727_s26, %s1727_s26, %s1728_s27  }
   0xd   :  { %s60_s14 = sshll.u32 %s1733_s13, 4  ;;  %s61_s14 = int_to_ptr.vmem [resolvable:$true] %s60_s14 }
   0xe   :  { %63 = dma.hbm_to_vmem [thread:$0]  %s59_s12, 48, %s61_s14, [#allocation10]  }
   0xf   :  { %1718 = dma.done.wait [#allocation4], 1152  }
  0x10   :  { %1719 = vsyncadd [#allocation4], 4294966144 }
  0x11   :  { %1720 = dma.done.wait [#allocation7], 12288  }
  0x12   :  { %1721 = vsyncadd [#allocation7], 4294955008 }
  0x13   :  { %1722 = dma.done.wait [#allocation10], 48  }
  0x14   :  { %1723 = vsyncadd [#allocation10], 4294967248  ;;  %v1781_v0 = vld [vmem:[#allocation8 + $0x168] sm:$0xff]  ;;  %v1783_v1 = vld [vmem:[#allocation8 + $0x150] sm:$0xff]  ;;  %v1734_v50 = vmov 0.0   ;;  %s1407_s20 = sshll.u32 %s2581_s5, 4  ;;  %s1408_s20 = int_to_ptr.hbm [resolvable:$true] %s1407_s20 }
  0x15   :  { %364 = vmatpush.msra.mxu3 %v1781_v0  ;;  %v1786_v2 = vld [vmem:[#allocation8 + $0x138] sm:$0xff]  ;;  %v136_v3 = vld [vmem:[#allocation6 + $0x168] sm:$0xff]  ;;  %v1789_v4 = vld [vmem:[#allocation8 + $0x120] sm:$0xff] }
  0x16   :  { %147 = vmatpush.msra.mxu0 %v136_v3  ;;  %v133_v5 = vld [vmem:[#allocation6 + $0x150] sm:$0xff]  ;;  %v130_v6 = vld [vmem:[#allocation6 + $0x138] sm:$0xff]  ;;  %v1792_v7 = vld [vmem:[#allocation8 + $0x108] sm:$0xff] }
  0x17   :  { %365 = vmatpush.msra.mxu3 %v1783_v1  ;;  %v127_v8 = vld [vmem:[#allocation6 + $0x120] sm:$0xff]  ;;  %v1795_v9 = vld [vmem:[#allocation8 + $0xf0] sm:$0xff]  ;;  %v124_v11 = vld [vmem:[#allocation6 + $0x108] sm:$0xff] }
  0x18   :  { %148 = vmatpush.msra.mxu0 %v133_v5  ;;  %v137_v10 = vld [vmem:[#allocation6 + $0x170] sm:$0xff]  ;;  %v134_v12 = vld [vmem:[#allocation6 + $0x158] sm:$0xff]  ;;  %v131_v14 = vld [vmem:[#allocation6 + $0x140] sm:$0xff] }
  0x19   :  { %366 = vmatpush.msra.mxu3 %v1786_v2  ;;  %191 = vmatpush.msra.mxu1 %v137_v10  ;;  %v1798_v13 = vld [vmem:[#allocation8 + $0xd8] sm:$0xff]  ;;  %v121_v15 = vld [vmem:[#allocation6 + $0xf0] sm:$0xff]  ;;  %v1801_v16 = vld [vmem:[#allocation8 + $0xc0] sm:$0xff] }
  0x1a   :  { %149 = vmatpush.msra.mxu0 %v130_v6  ;;  %v128_v17 = vld [vmem:[#allocation6 + $0x128] sm:$0xff]  ;;  %v118_v18 = vld [vmem:[#allocation6 + $0xd8] sm:$0xff]  ;;  %v125_v20 = vld [vmem:[#allocation6 + $0x110] sm:$0xff] }
  0x1b   :  { %367 = vmatpush.msra.mxu3 %v1789_v4  ;;  %192 = vmatpush.msra.mxu1 %v134_v12  ;;  %v1804_v19 = vld [vmem:[#allocation8 + $0xa8] sm:$0xff]  ;;  %v115_v21 = vld [vmem:[#allocation6 + $0xc0] sm:$0xff]  ;;  %v1807_v22 = vld [vmem:[#allocation8 + $0x90] sm:$0xff] }
  0x1c   :  { %150 = vmatpush.msra.mxu0 %v127_v8  ;;  %v122_v23 = vld [vmem:[#allocation6 + $0xf8] sm:$0xff]  ;;  %v112_v24 = vld [vmem:[#allocation6 + $0xa8] sm:$0xff]  ;;  %v119_v26 = vld [vmem:[#allocation6 + $0xe0] sm:$0xff] }
  0x1d   :  { %368 = vmatpush.msra.mxu3 %v1792_v7  ;;  %193 = vmatpush.msra.mxu1 %v131_v14  ;;  %v1810_v25 = vld [vmem:[#allocation8 + $0x78] sm:$0xff]  ;;  %v109_v27 = vld [vmem:[#allocation6 + $0x90] sm:$0xff]  ;;  %v1813_v28 = vld [vmem:[#allocation8 + $0x60] sm:$0xff] }
  0x1e   :  { %151 = vmatpush.msra.mxu0 %v124_v11  ;;  %v116_v29 = vld [vmem:[#allocation6 + $0xc8] sm:$0xff]  ;;  %v106_v30 = vld [vmem:[#allocation6 + $0x78] sm:$0xff]  ;;  %v113_v32 = vld [vmem:[#allocation6 + $0xb0] sm:$0xff] }
  0x1f   :  { %369 = vmatpush.msra.mxu3 %v1795_v9  ;;  %194 = vmatpush.msra.mxu1 %v128_v17  ;;  %v1816_v31 = vld [vmem:[#allocation8 + $0x48] sm:$0xff]  ;;  %v103_v33 = vld [vmem:[#allocation6 + $0x60] sm:$0xff]  ;;  %v1819_v34 = vld [vmem:[#allocation8 + $0x30] sm:$0xff] }
  0x20   :  { %152 = vmatpush.msra.mxu0 %v121_v15  ;;  %2615 = vst [vmem:[#allocation16_spill] sm:$0xff] %v1819_v34  ;;  %v110_v35 = vld [vmem:[#allocation6 + $0x98] sm:$0xff]  ;;  %v100_v36 = vld [vmem:[#allocation6 + $0x48] sm:$0xff]  ;;  %v107_v38 = vld [vmem:[#allocation6 + $0x80] sm:$0xff] }
  0x21   :  { %370 = vmatpush.msra.mxu3 %v1798_v13  ;;  %195 = vmatpush.msra.mxu1 %v125_v20  ;;  %v1822_v37 = vld [vmem:[#allocation8 + $0x18] sm:$0xff]  ;;  %v97_v39 = vld [vmem:[#allocation6 + $0x30] sm:$0xff]  ;;  %v1825_v40 = vld [vmem:[#allocation8] sm:$0xff] }
  0x22   :  { %153 = vmatpush.msra.mxu0 %v118_v18  ;;  %2616 = vst [vmem:[#allocation17_spill] sm:$0xff] %v1822_v37  ;;  %v104_v41 = vld [vmem:[#allocation6 + $0x68] sm:$0xff]  ;;  %v1828_v42 = vld [vmem:[#allocation8 + $0x170] sm:$0xff]  ;;  %v94_v43 = vld [vmem:[#allocation6 + $0x18] sm:$0xff] }
  0x23   :  { %371 = vmatpush.msra.mxu3 %v1801_v16  ;;  %196 = vmatpush.msra.mxu1 %v122_v23  ;;  %2617 = vst [vmem:[#allocation18_spill] sm:$0xff] %v1825_v40  ;;  %v101_v44 = vld [vmem:[#allocation6 + $0x50] sm:$0xff]  ;;  %v1831_v45 = vld [vmem:[#allocation8 + $0x158] sm:$0xff]  ;;  %v91_v46 = vld [vmem:[#allocation6] sm:$0xff] }
  0x24   :  { %154 = vmatpush.msra.mxu0 %v115_v21  ;;  %v1834_v47 = vld [vmem:[#allocation3] sm:$0xff]  ;;  %v1836_v49 = vld [vmem:[#allocation8 + $0x140] sm:$0xff]  ;;  %v1840_v53 = vld [vmem:[#allocation8 + $0x128] sm:$0xff] }
  0x25   :  { %372 = vmatpush.msra.mxu3 %v1804_v19  ;;  %197 = vmatpush.msra.mxu1 %v119_v26  ;;  %v98_v48 = vld [vmem:[#allocation6 + $0x38] sm:$0xff]  ;;  %v95_v52 = vld [vmem:[#allocation6 + $0x20] sm:$0xff]  ;;  %v92_v55 = vld [vmem:[#allocation6 + $0x8] sm:$0xff] }
  0x26   :  { %155 = vmatpush.msra.mxu0 %v112_v24  ;;  %v138_v51 = vld [vmem:[#allocation6 + $0x178] sm:$0xff]  ;;  %v135_v54 = vld [vmem:[#allocation6 + $0x160] sm:$0xff]  ;;  %v1844_v56 = vld [vmem:[#allocation8 + $0x110] sm:$0xff] }
  0x27   :  { %373 = vmatpush.msra.mxu3 %v1807_v22  ;;  %198 = vmatpush.msra.mxu1 %v116_v29  ;;  %v132_v57 = vld [vmem:[#allocation6 + $0x148] sm:$0xff]  ;;  %v1848_v58 = vld [vmem:[#allocation8 + $0xf8] sm:$0xff]  ;;  %v129_v59 = vld [vmem:[#allocation6 + $0x130] sm:$0xff] }
  0x28   :  { %156 = vmatpush.msra.mxu0 %v109_v27  ;;  %235 = vmatpush.msra.mxu2 %v138_v51  ;;  %v1853_v60 = vld [vmem:[#allocation8 + $0xe0] sm:$0xff]  ;;  %v126_v61 = vld [vmem:[#allocation6 + $0x118] sm:$0xff]  ;;  %v1858_v62 = vld [vmem:[#allocation8 + $0xc8] sm:$0xff] }
  0x29   :  { %374 = vmatpush.msra.mxu3 %v1810_v25  ;;  %199 = vmatpush.msra.mxu1 %v113_v32  ;;  %v123_v63 = vld [vmem:[#allocation6 + $0x100] sm:$0xff]  ;;  %v1863_v3 = vld [vmem:[#allocation8 + $0xb0] sm:$0xff]  ;;  %v120_v5 = vld [vmem:[#allocation6 + $0xe8] sm:$0xff] }
  0x2a   :  { %157 = vmatpush.msra.mxu0 %v106_v30  ;;  %236 = vmatpush.msra.mxu2 %v135_v54  ;;  %v1868_v6 = vld [vmem:[#allocation8 + $0x98] sm:$0xff]  ;;  %v117_v8 = vld [vmem:[#allocation6 + $0xd0] sm:$0xff]  ;;  %v1873_v10 = vld [vmem:[#allocation8 + $0x80] sm:$0xff] }
  0x2b   :  { %375 = vmatpush.msra.mxu3 %v1813_v28  ;;  %200 = vmatpush.msra.mxu1 %v110_v35  ;;  %v114_v11 = vld [vmem:[#allocation6 + $0xb8] sm:$0xff]  ;;  %v1878_v12 = vld [vmem:[#allocation8 + $0x68] sm:$0xff]  ;;  %v111_v14 = vld [vmem:[#allocation6 + $0xa0] sm:$0xff] }
  0x2c   :  { %158 = vmatpush.msra.mxu0 %v103_v33  ;;  %237 = vmatpush.msra.mxu2 %v132_v57  ;;  %v1883_v15 = vld [vmem:[#allocation8 + $0x50] sm:$0xff]  ;;  %v108_v17 = vld [vmem:[#allocation6 + $0x88] sm:$0xff]  ;;  %v1888_v18 = vld [vmem:[#allocation8 + $0x38] sm:$0xff] }
  0x2d   :  { %376 = vmatpush.msra.mxu3 %v1816_v31  ;;  %201 = vmatpush.msra.mxu1 %v107_v38  ;;  %2618 = vst [vmem:[#allocation19_spill] sm:$0xff] %v1888_v18  ;;  %v105_v20 = vld [vmem:[#allocation6 + $0x70] sm:$0xff]  ;;  %v1893_v21 = vld [vmem:[#allocation8 + $0x20] sm:$0xff]  ;;  %v102_v23 = vld [vmem:[#allocation6 + $0x58] sm:$0xff] }
  0x2e   :  { %159 = vmatpush.msra.mxu0 %v100_v36  ;;  %238 = vmatpush.msra.mxu2 %v129_v59  ;;  %2619 = vst [vmem:[#allocation20_spill] sm:$0xff] %v1893_v21  ;;  %v1898_v24 = vld [vmem:[#allocation8 + $0x8] sm:$0xff]  ;;  %v99_v26 = vld [vmem:[#allocation6 + $0x40] sm:$0xff]  ;;  %v1903_v27 = vld [vmem:[#allocation8 + $0x178] sm:$0xff] }
  0x2f   :  { %377 = vmatpush.msra.mxu3 %v1819_v34  ;;  %202 = vmatpush.msra.mxu1 %v104_v41  ;;  %2620 = vst [vmem:[#allocation21_spill] sm:$0xff] %v1898_v24  ;;  %v96_v29 = vld [vmem:[#allocation6 + $0x28] sm:$0xff]  ;;  %v1909_v30 = vld [vmem:[#allocation8 + $0x160] sm:$0xff]  ;;  %v93_v32 = vld [vmem:[#allocation6 + $0x10] sm:$0xff] }
  0x30   :  { %160 = vmatpush.msra.mxu0 %v97_v39  ;;  %239 = vmatpush.msra.mxu2 %v126_v61  ;;  %v1913_v33 = vld [vmem:[#allocation8 + $0x148] sm:$0xff]  ;;  %v1918_v35 = vld [vmem:[#allocation8 + $0x130] sm:$0xff]  ;;  %v1923_v36 = vld [vmem:[#allocation8 + $0x118] sm:$0xff] }
  0x31   :  { %378 = vmatpush.msra.mxu3 %v1822_v37  ;;  %203 = vmatpush.msra.mxu1 %v101_v44  ;;  %v1929_v38 = vld [vmem:[#allocation8 + $0x100] sm:$0xff]  ;;  %v1935_v39 = vld [vmem:[#allocation8 + $0xe8] sm:$0xff]  ;;  %v1941_v41 = vld [vmem:[#allocation8 + $0xd0] sm:$0xff] }
  0x32   :  { %161 = vmatpush.msra.mxu0 %v94_v43  ;;  %240 = vmatpush.msra.mxu2 %v123_v63  ;;  %v1947_v43 = vld [vmem:[#allocation8 + $0xb8] sm:$0xff]  ;;  %v1953_v44 = vld [vmem:[#allocation8 + $0xa0] sm:$0xff]  ;;  %v1989_v54 = vld [vmem:[#allocation8 + $0x10] sm:$0xff] }
  0x33   :  { %379 = vmatpush.msra.mxu3 %v1825_v40  ;;  %204 = vmatpush.msra.mxu1 %v98_v48  ;;  %v1971_v48 = vld [vmem:[#allocation8 + $0x58] sm:$0xff]  ;;  %v1977_v51 = vld [vmem:[#allocation8 + $0x40] sm:$0xff]  ;;  %2623 = vst [vmem:[#allocation24_spill] sm:$0xff] %v1989_v54  ;;  %v85_v57 = vld [vmem:[#allocation3 + $0x18] sm:$0xff] }
  0x34   :  { %380 = vmatmul.f32.vlgmr.msra.gmra.mxu3 %v1734_v50  ;;  %162 = vmatpush.msra.mxu0 %v91_v46  ;;  %v1959_v46 = vld [vmem:[#allocation8 + $0x88] sm:$0xff]  ;;  %2621 = vst [vmem:[#allocation22_spill] sm:$0xff] %v1977_v51  ;;  %v139_v59 = vld [vmem:[#allocation9] sm:$0x7]  ;;  %v86_v63 = vld [vmem:[#allocation3 + $0x20] sm:$0xff] }
  0x35   :  { %384 = vmatpush.msrb.mxu3 %v1828_v42  ;;  %163 = vmatmul.f32.vlgmr.msra.gmra.mxu0 %v1834_v47  ;;  %v2061_v61 = vperm.slane %v139_v59, 0 }
  0x36   :  { %205 = vmatpush.msra.mxu1 %v95_v52  ;;  %479 = vmatpush.msrb.mxu0 %v1781_v0  ;;  %v1983_v52 = vld [vmem:[#allocation8 + $0x28] sm:$0xff] }
  0x37   :  { %385 = vmatpush.msrb.mxu3 %v1831_v45  ;;  %241 = vmatpush.msra.mxu2 %v120_v5  ;;  %2622 = vst [vmem:[#allocation23_spill] sm:$0xff] %v1983_v52 }
  0x38   :  { %206 = vmatpush.msra.mxu1 %v92_v55  ;;  %480 = vmatpush.msrb.mxu0 %v1783_v1  ;;  %v84_v55 = vld [vmem:[#allocation3 + $0x10] sm:$0xff]  ;;  %2624 = vst [vmem:[#allocation25_spill] sm:$0xff] %v2061_v61 }
  0x39   :  { %386 = vmatpush.msrb.mxu3 %v1836_v49  ;;  %207 = vmatmul.f32.vlgmr.msra.gmra.mxu1 %v1834_v47 }
  0x3a   :  { %481 = vmatpush.msrb.mxu0 %v1786_v2  ;;  %499 = vmatpush.msrb.mxu1 %v1828_v42 }
  0x3b   :  { %387 = vmatpush.msrb.mxu3 %v1840_v53  ;;  %242 = vmatpush.msra.mxu2 %v117_v8 }
  0x3c   :  { %482 = vmatpush.msrb.mxu0 %v1789_v4  ;;  %500 = vmatpush.msrb.mxu1 %v1831_v45 }
  0x3d   :  { %388 = vmatpush.msrb.mxu3 %v1844_v56  ;;  %243 = vmatpush.msra.mxu2 %v114_v11 }
  0x3e   :  { %483 = vmatpush.msrb.mxu0 %v1792_v7  ;;  %501 = vmatpush.msrb.mxu1 %v1836_v49 }
  0x3f   :  { %389 = vmatpush.msrb.mxu3 %v1848_v58  ;;  %244 = vmatpush.msra.mxu2 %v111_v14 }
  0x40   :  { %484 = vmatpush.msrb.mxu0 %v1795_v9  ;;  %502 = vmatpush.msrb.mxu1 %v1840_v53 }
  0x41   :  { %390 = vmatpush.msrb.mxu3 %v1853_v60  ;;  %245 = vmatpush.msra.mxu2 %v108_v17  ;;  %v87_v17 = vld [vmem:[#allocation3 + $0x28] sm:$0xff] }
  0x42   :  { %485 = vmatpush.msrb.mxu0 %v1798_v13  ;;  %503 = vmatpush.msrb.mxu1 %v1844_v56 }
  0x43   :  { %391 = vmatpush.msrb.mxu3 %v1858_v62  ;;  %246 = vmatpush.msra.mxu2 %v105_v20 }
  0x44   :  { %486 = vmatpush.msrb.mxu0 %v1801_v16  ;;  %504 = vmatpush.msrb.mxu1 %v1848_v58 }
  0x45   :  { %392 = vmatpush.msrb.mxu3 %v1863_v3  ;;  %247 = vmatpush.msra.mxu2 %v102_v23  ;;  %v2064_v23 = vperm.slane %v139_v59, 1 }
  0x46   :  { %487 = vmatpush.msrb.mxu0 %v1804_v19  ;;  %505 = vmatpush.msrb.mxu1 %v1853_v60 }
  0x47   :  { %393 = vmatpush.msrb.mxu3 %v1868_v6  ;;  %248 = vmatpush.msra.mxu2 %v99_v26  ;;  %2625 = vst [vmem:[#allocation26_spill] sm:$0xff] %v2064_v23  ;;  %v88_v26 = vld [vmem:[#allocation3 + $0x30] sm:$0xff] }
  0x48   :  { %488 = vmatpush.msrb.mxu0 %v1807_v22  ;;  %506 = vmatpush.msrb.mxu1 %v1858_v62 }
  0x49   :  { %394 = vmatpush.msrb.mxu3 %v1873_v10  ;;  %249 = vmatpush.msra.mxu2 %v96_v29 }
  0x4a   :  { %489 = vmatpush.msrb.mxu0 %v1810_v25  ;;  %507 = vmatpush.msrb.mxu1 %v1863_v3 }
  0x4b   :  { %395 = vmatpush.msrb.mxu3 %v1878_v12  ;;  %250 = vmatpush.msra.mxu2 %v93_v32 }
  0x4c   :  { %490 = vmatpush.msrb.mxu0 %v1813_v28  ;;  %508 = vmatpush.msrb.mxu1 %v1868_v6 }
  0x4d   :  { %396 = vmatpush.msrb.mxu3 %v1883_v15  ;;  %251 = vmatmul.f32.vlgmr.msra.gmra.mxu2 %v1834_v47  ;;  %v1965_v47 = vld [vmem:[#allocation8 + $0x70] sm:$0xff] }
  0x4e   :  { %491 = vmatpush.msrb.mxu0 %v1816_v31  ;;  %509 = vmatpush.msrb.mxu1 %v1873_v10 }
  0x4f   :  { %397 = vmatpush.msrb.mxu3 %v1888_v18  ;;  %519 = vmatpush.msrb.mxu2 %v1903_v27 }
  0x50   :  { %492 = vmatpush.msrb.mxu0 %v1819_v34  ;;  %510 = vmatpush.msrb.mxu1 %v1878_v12 }
  0x51   :  { %398 = vmatpush.msrb.mxu3 %v1893_v21  ;;  %520 = vmatpush.msrb.mxu2 %v1909_v30 }
  0x52   :  { %493 = vmatpush.msrb.mxu0 %v1822_v37  ;;  %511 = vmatpush.msrb.mxu1 %v1883_v15 }
  0x53   :  { %399 = vmatpush.msrb.mxu3 %v1898_v24  ;;  %521 = vmatpush.msrb.mxu2 %v1913_v33 }
  0x54   :  { %400 = vmatmul.f32.vlgmr.msrb.gmra.mxu3 %v1734_v50  ;;  %512 = vmatpush.msrb.mxu1 %v1888_v18 }
  0x55   :  { %404 = vmatpush.msra.mxu3 %v1903_v27  ;;  %494 = vmatpush.msrb.mxu0 %v1825_v40 }
  0x56   :  { %513 = vmatpush.msrb.mxu1 %v1893_v21  ;;  %522 = vmatpush.msrb.mxu2 %v1918_v35 }
  0x57   :  { %405 = vmatpush.msra.mxu3 %v1909_v30  ;;  %615 = vmatpush.msra.mxu0 %v1828_v42 }
  0x58   :  { %514 = vmatpush.msrb.mxu1 %v1898_v24  ;;  %523 = vmatpush.msrb.mxu2 %v1923_v36 }
  0x59   :  { %406 = vmatpush.msra.mxu3 %v1913_v33  ;;  %616 = vmatpush.msra.mxu0 %v1831_v45 }
  0x5a   :  { %635 = vmatpush.msra.mxu1 %v1903_v27  ;;  %524 = vmatpush.msrb.mxu2 %v1929_v38 }
  0x5b   :  { %407 = vmatpush.msra.mxu3 %v1918_v35  ;;  %617 = vmatpush.msra.mxu0 %v1836_v49 }
  0x5c   :  { %636 = vmatpush.msra.mxu1 %v1909_v30  ;;  %525 = vmatpush.msrb.mxu2 %v1935_v39 }
  0x5d   :  { %408 = vmatpush.msra.mxu3 %v1923_v36  ;;  %618 = vmatpush.msra.mxu0 %v1840_v53 }
  0x5e   :  { %637 = vmatpush.msra.mxu1 %v1913_v33  ;;  %526 = vmatpush.msrb.mxu2 %v1941_v41 }
  0x5f   :  { %409 = vmatpush.msra.mxu3 %v1929_v38  ;;  %619 = vmatpush.msra.mxu0 %v1844_v56 }
  0x60   :  { %638 = vmatpush.msra.mxu1 %v1918_v35  ;;  %527 = vmatpush.msrb.mxu2 %v1947_v43 }
  0x61   :  { %410 = vmatpush.msra.mxu3 %v1935_v39  ;;  %620 = vmatpush.msra.mxu0 %v1848_v58 }
  0x62   :  { %639 = vmatpush.msra.mxu1 %v1923_v36  ;;  %528 = vmatpush.msrb.mxu2 %v1953_v44 }
  0x63   :  { %411 = vmatpush.msra.mxu3 %v1941_v41  ;;  %621 = vmatpush.msra.mxu0 %v1853_v60 }
  0x64   :  { %640 = vmatpush.msra.mxu1 %v1929_v38  ;;  %529 = vmatpush.msrb.mxu2 %v1959_v46 }
  0x65   :  { %412 = vmatpush.msra.mxu3 %v1947_v43  ;;  %622 = vmatpush.msra.mxu0 %v1858_v62 }
  0x66   :  { %641 = vmatpush.msra.mxu1 %v1935_v39  ;;  %530 = vmatpush.msrb.mxu2 %v1965_v47 }
  0x67   :  { %413 = vmatpush.msra.mxu3 %v1953_v44  ;;  %623 = vmatpush.msra.mxu0 %v1863_v3 }
  0x68   :  { %642 = vmatpush.msra.mxu1 %v1941_v41  ;;  %531 = vmatpush.msrb.mxu2 %v1971_v48 }
  0x69   :  { %414 = vmatpush.msra.mxu3 %v1959_v46  ;;  %624 = vmatpush.msra.mxu0 %v1868_v6 }
  0x6a   :  { %643 = vmatpush.msra.mxu1 %v1947_v43  ;;  %532 = vmatpush.msrb.mxu2 %v1977_v51 }
  0x6b   :  { %415 = vmatpush.msra.mxu3 %v1965_v47  ;;  %625 = vmatpush.msra.mxu0 %v1873_v10 }
  0x6c   :  { %644 = vmatpush.msra.mxu1 %v1953_v44  ;;  %533 = vmatpush.msrb.mxu2 %v1983_v52 }
  0x6d   :  { %416 = vmatpush.msra.mxu3 %v1971_v48  ;;  %626 = vmatpush.msra.mxu0 %v1878_v12 }
  0x6e   :  { %645 = vmatpush.msra.mxu1 %v1959_v46  ;;  %534 = vmatpush.msrb.mxu2 %v1989_v54 }
  0x6f   :  { %417 = vmatpush.msra.mxu3 %v1977_v51  ;;  %627 = vmatpush.msra.mxu0 %v1883_v15 }
  0x70   :  { %646 = vmatpush.msra.mxu1 %v1965_v47  ;;  %711 = vmatpush.msra.mxu2 %v1781_v0 }
  0x71   :  { %418 = vmatpush.msra.mxu3 %v1983_v52  ;;  %628 = vmatpush.msra.mxu0 %v1888_v18 }
  0x72   :  { %647 = vmatpush.msra.mxu1 %v1971_v48  ;;  %712 = vmatpush.msra.mxu2 %v1783_v1 }
  0x73   :  { %419 = vmatpush.msra.mxu3 %v1989_v54  ;;  %629 = vmatpush.msra.mxu0 %v1893_v21 }
  0x74   :  { %420 = vmatmul.f32.vlgmr.msra.gmra.mxu3 %v1734_v50  ;;  %648 = vmatpush.msra.mxu1 %v1977_v51  ;;  %v83_v50 = vld [vmem:[#allocation3 + $0x8] sm:$0xff] }
  0x75   :  { %595 = vmatpush.msrb.mxu3 %v1781_v0  ;;  %630 = vmatpush.msra.mxu0 %v1898_v24 }
  0x76   :  { %649 = vmatpush.msra.mxu1 %v1983_v52  ;;  %713 = vmatpush.msra.mxu2 %v1786_v2 }
  0x77   :  { %596 = vmatpush.msrb.mxu3 %v1783_v1  ;;  %166 = vmatmul.f32.gmra.mxu0 %v83_v50 }
  0x78   :  { %650 = vmatpush.msra.mxu1 %v1989_v54  ;;  %714 = vmatpush.msra.mxu2 %v1789_v4 }
  0x79   :  { %597 = vmatpush.msrb.mxu3 %v1786_v2  ;;  %210 = vmatmul.f32.gmra.mxu1 %v83_v50 }
  0x7a   :  { %715 = vmatpush.msra.mxu2 %v1792_v7 }
  0x7b   :  { %598 = vmatpush.msrb.mxu3 %v1789_v4  ;;  %254 = vmatmul.f32.gmra.mxu2 %v83_v50 }
  0x7c   :  { %716 = vmatpush.msra.mxu2 %v1795_v9 }
  0x7d   :  { %599 = vmatpush.msrb.mxu3 %v1792_v7 }
  0x7e   :  { %717 = vmatpush.msra.mxu2 %v1798_v13 }
  0x7f   :  { %600 = vmatpush.msrb.mxu3 %v1795_v9  ;;  %169 = vmatmul.f32.gmra.mxu0 %v84_v55 }
  0x80   :  { %718 = vmatpush.msra.mxu2 %v1801_v16 }
  0x81   :  { %601 = vmatpush.msrb.mxu3 %v1798_v13  ;;  %213 = vmatmul.f32.gmra.mxu1 %v84_v55 }
  0x82   :  { %719 = vmatpush.msra.mxu2 %v1804_v19 }
  0x83   :  { %602 = vmatpush.msrb.mxu3 %v1801_v16  ;;  %257 = vmatmul.f32.gmra.mxu2 %v84_v55 }
  0x84   :  { %720 = vmatpush.msra.mxu2 %v1807_v22 }
  0x85   :  { %603 = vmatpush.msrb.mxu3 %v1804_v19 }
  0x86   :  { %721 = vmatpush.msra.mxu2 %v1810_v25 }
  0x87   :  { %604 = vmatpush.msrb.mxu3 %v1807_v22  ;;  %172 = vmatmul.f32.gmra.mxu0 %v85_v57 }
  0x88   :  { %722 = vmatpush.msra.mxu2 %v1813_v28 }
  0x89   :  { %605 = vmatpush.msrb.mxu3 %v1810_v25  ;;  %216 = vmatmul.f32.gmra.mxu1 %v85_v57 }
  0x8a   :  { %723 = vmatpush.msra.mxu2 %v1816_v31 }
  0x8b   :  { %606 = vmatpush.msrb.mxu3 %v1813_v28  ;;  %260 = vmatmul.f32.gmra.mxu2 %v85_v57 }
  0x8c   :  { %724 = vmatpush.msra.mxu2 %v1819_v34 }
  0x8d   :  { %607 = vmatpush.msrb.mxu3 %v1816_v31 }
  0x8e   :  { %725 = vmatpush.msra.mxu2 %v1822_v37 }
  0x8f   :  { %608 = vmatpush.msrb.mxu3 %v1819_v34  ;;  %175 = vmatmul.f32.gmra.mxu0 %v86_v63 }
  0x90   :  { %726 = vmatpush.msra.mxu2 %v1825_v40 }
  0x91   :  { %609 = vmatpush.msrb.mxu3 %v1822_v37  ;;  %219 = vmatmul.f32.gmra.mxu1 %v86_v63 }
  0x93   :  { %610 = vmatpush.msrb.mxu3 %v1825_v40  ;;  %263 = vmatmul.f32.gmra.mxu2 %v86_v63  ;;  %v89_v63 = vld [vmem:[#allocation3 + $0x38] sm:$0xff] }
  0x95   :  { %731 = vmatpush.msra.mxu3 %v1828_v42 }
  0x97   :  { %732 = vmatpush.msra.mxu3 %v1831_v45  ;;  %178 = vmatmul.f32.gmra.mxu0 %v87_v17 }
  0x99   :  { %733 = vmatpush.msra.mxu3 %v1836_v49  ;;  %222 = vmatmul.f32.gmra.mxu1 %v87_v17 }
  0x9b   :  { %734 = vmatpush.msra.mxu3 %v1840_v53  ;;  %266 = vmatmul.f32.gmra.mxu2 %v87_v17 }
  0x9d   :  { %735 = vmatpush.msra.mxu3 %v1844_v56 }
  0x9f   :  { %736 = vmatpush.msra.mxu3 %v1848_v58  ;;  %181 = vmatmul.f32.gmra.mxu0 %v88_v26 }
  0xa1   :  { %737 = vmatpush.msra.mxu3 %v1853_v60  ;;  %225 = vmatmul.f32.gmra.mxu1 %v88_v26 }
  0xa3   :  { %738 = vmatpush.msra.mxu3 %v1858_v62  ;;  %269 = vmatmul.f32.gmra.mxu2 %v88_v26 }
  0xa5   :  { %739 = vmatpush.msra.mxu3 %v1863_v3 }
  0xa7   :  { %740 = vmatpush.msra.mxu3 %v1868_v6  ;;  %184 = vmatmul.f32.gmra.mxu0 %v89_v63 }
  0xa9   :  { %741 = vmatpush.msra.mxu3 %v1873_v10  ;;  %228 = vmatmul.f32.gmra.mxu1 %v89_v63 }
  0xab   :  { %742 = vmatpush.msra.mxu3 %v1878_v12  ;;  %272 = vmatmul.f32.gmra.mxu2 %v89_v63 }
  0xad   :  { %743 = vmatpush.msra.mxu3 %v1883_v15 }
  0xaf   :  { %744 = vmatpush.msra.mxu3 %v1888_v18 }
  0xb1   :  { %745 = vmatpush.msra.mxu3 %v1893_v21 }
  0xb2   :  { %v164_v5 = vpop.f32.mrf.mxu0 }
  0xb3   :  { %746 = vmatpush.msra.mxu3 %v1898_v24  ;;  %v165_v8 = vadd.f32 %v164_v5, %v2061_v61  ;;  %v2070_v61 = vld [vmem:[%s2580_s4] ss:$0 sm:$0xff] }
  0xb6   :  { %v208_v29 = vpop.f32.mrf.mxu1 }
  0xb7   :  { %v381_v11 = vpop.f32.mrf.mxu3  ;;  %v209_v32 = vadd.f32 %v208_v29, %v2064_v23 }
  0xb8   :  { %v424_v14 = vadd.f32 %v381_v11, %v165_v8  ;;  %v90_v11 = vld [vmem:[#allocation3 + $0x40] sm:$0xff] }
  0xb9   :  { %187 = vmatmul.f32.gmra.mxu0 %v90_v11  ;;  %231 = vmatmul.f32.gmra.mxu1 %v90_v11 }
  0xba   :  { %v1430_v20 = vmul.f32 -1.442695, %v424_v14  ;;  %275 = vmatmul.f32.gmra.mxu2 %v90_v11  ;;  %v2072_v11 = vperm.slane %v139_v59, 2 }
  0xbc   :  { %1459 = vpow2.f32 %v1430_v20 }
  0xc2   :  { %v1460_v50 = vpop.eup %1459 }
  0xc3   :  { %v428_v5 = vadd.f32 1.0, %v1460_v50 }
  0xc5   :  { %vm434_vm0 = vweird.f32 %v428_v5 }
  0xd7   :  { %v401_v55 = vpop.f32.mrf.mxu3 }
  0xd8   :  { %v444_v57 = vadd.f32 %v401_v55, %v209_v32 }
  0xda   :  { %v1431_v8 = vmul.f32 -1.442695, %v444_v57  ;;  %v440_v57 = vand.u32 2147483648, %v428_v5 }
  0xdc   :  { %1461 = vpow2.f32 %v1431_v8  ;;  %v438_v8 = vand.u32 2147483647, %v428_v5  ;;  %v441_v24 = vor.u32 1.1754944e-38, %v440_v57 }
  0xdd   :  { %1463 = vrcp.f32 %v428_v5 }
  0xde   :  { %vm439_vm3 = vcmp.eq.f32.partialorder %v438_v8, 8.507059e+37 }
  0xe2   :  { %v1462_v14 = vpop.eup %1461 }
  0xe3   :  { %v1464_v17 = vpop.eup %1463  ;;  %v448_v20 = vadd.f32 1.0, %v1462_v14 }
  0xe4   :  { %v430_v26 = vmul.f32 %v1464_v17, %v428_v5  ;;  %vm435_vm1 = vweird.f32 %v1464_v17 }
  0xe5   :  { %1465 = vrcp.f32 %v448_v20  ;;  %vm436_vm2 = vmor %vm434_vm0, %vm435_vm1  ;;  %vm454_vm4 = vweird.f32 %v448_v20  ;;  %v458_v37 = vand.u32 2147483647, %v448_v20 }
  0xe6   :  { %v431_v29 = vsub.f32 1.0, %v430_v26  ;;  %v252_v26 = vpop.f32.mrf.mxu2 }
  0xe7   :  { %v253_v5 = vadd.f32 %v252_v26, %v2072_v11  ;;  %vm459_vm7 = vcmp.eq.f32.partialorder %v458_v37, 8.507059e+37 }
  0xe8   :  { %v432_v55 = vmul.f32 %v1464_v17, %v431_v29 }
  0xea   :  { %v433_v63 = vadd.f32 %v1464_v17, %v432_v55 }
  0xeb   :  { %v1466_v23 = vpop.eup %1465 }
  0xec   :  { %v450_v32 = vmul.f32 %v1466_v23, %v448_v20  ;;  %v437_v40 = vsel %vm436_vm2, %v1464_v17, %v433_v63  ;;  %vm455_vm5 = vweird.f32 %v1466_v23 }
  0xed   :  { %v442_v54 = vsel %vm439_vm3, %v441_v24, %v437_v40  ;;  %vm456_vm6 = vmor %vm454_vm4, %vm455_vm5 }
  0xee   :  { %v451_v50 = vsub.f32 1.0, %v450_v32  ;;  %v460_v32 = vand.u32 2147483648, %v448_v20 }
  0xf0   :  { %v452_v14 = vmul.f32 %v1466_v23, %v451_v50  ;;  %v461_v59 = vor.u32 1.1754944e-38, %v460_v32 }
  0xf2   :  { %v453_v21 = vadd.f32 %v1466_v23, %v452_v14 }
  0xf4   :  { %v457_v50 = vsel %vm456_vm6, %v1466_v23, %v453_v21 }
  0xf5   :  { %v462_v17 = vsel %vm459_vm7, %v461_v59, %v457_v50 }
  0xf6   :  { %v468_v57 = vsub.f32 1.0, %v462_v17  ;;  %v470_v34 = vmul.f32 0.0, %v462_v17  ;;  %v2649_v17 = vld [vmem:[#allocation25_spill] sm:$0xff] }
  0xf7   :  { %v421_v29 = vpop.f32.mrf.mxu3 }
  0xf8   :  { %v464_v55 = vadd.f32 %v2070_v61, %v421_v29 }
  0xfa   :  { %v465_v52 = vmul.f32 %v464_v55, %v442_v54 }
  0xfc   :  { %v466_v18 = vadd.f32 %v465_v52, %v253_v5 }
  0xfe   :  { %1467 = vtanh.f32 %v466_v18  ;;  %v255_v40 = vpop.f32.mrf.mxu2 }
 0x104   :  { %v1468_v63 = vpop.eup %1467 }
 0x105   :  { %v469_v8 = vmul.f32 %v1468_v63, %v468_v57  ;;  %v2650_v63 = vld [vmem:[#allocation26_spill] sm:$0xff] }
 0x106   :  { %v2142_v24 = vpop.f32.mrf.mxu2 }
 0x107   :  { %v2076_v51 = vadd.f32 %v470_v34, %v469_v8 }
 0x109   :  { %472 = vst [vmem:[#allocation11] sm:$0xff] %v2076_v51  ;;  %495 = vmatmul.f32.vlgmr.msrb.gmra.mxu0 %v2076_v51  ;;  %515 = vmatmul.f32.vlgmr.msrb.gmra.mxu1 %v2076_v51 }
 0x10a   :  { %535 = vmatmul.f32.vlgmr.msrb.gmra.mxu2 %v2076_v51  ;;  %751 = vmatpush.msrb.mxu0 %v1903_v27 }
 0x10b   :  { %827 = vmatpush.msrb.mxu1 %v1781_v0  ;;  %847 = vmatpush.msrb.mxu2 %v1828_v42  ;;  %v2626_v0 = vld [vmem:[#allocation22_spill] sm:$0xff] }
 0x10c   :  { %752 = vmatpush.msrb.mxu0 %v1909_v30 }
 0x10d   :  { %828 = vmatpush.msrb.mxu1 %v1783_v1  ;;  %848 = vmatpush.msrb.mxu2 %v1831_v45  ;;  %v2627_v1 = vld [vmem:[#allocation16_spill] sm:$0xff] }
 0x10e   :  { %753 = vmatpush.msrb.mxu0 %v1913_v33  ;;  %v2148_v23 = vpop.f32.mrf.mxu2 }
 0x10f   :  { %829 = vmatpush.msrb.mxu1 %v1786_v2  ;;  %849 = vmatpush.msrb.mxu2 %v1836_v49  ;;  %v2628_v2 = vld [vmem:[#allocation19_spill] sm:$0xff] }
 0x110   :  { %754 = vmatpush.msrb.mxu0 %v1918_v35 }
 0x111   :  { %830 = vmatpush.msrb.mxu1 %v1789_v4  ;;  %850 = vmatpush.msrb.mxu2 %v1840_v53  ;;  %v2629_v4 = vld [vmem:[#allocation23_spill] sm:$0xff] }
 0x112   :  { %755 = vmatpush.msrb.mxu0 %v1923_v36 }
 0x113   :  { %831 = vmatpush.msrb.mxu1 %v1792_v7  ;;  %851 = vmatpush.msrb.mxu2 %v1844_v56  ;;  %v2630_v7 = vld [vmem:[#allocation17_spill] sm:$0xff] }
 0x114   :  { %756 = vmatpush.msrb.mxu0 %v1929_v38  ;;  %2639 = vst [vmem:[#allocation17_spill] sm:$0xff] %v2148_v23 }
 0x115   :  { %832 = vmatpush.msrb.mxu1 %v1795_v9  ;;  %852 = vmatpush.msrb.mxu2 %v1848_v58  ;;  %v2631_v9 = vld [vmem:[#allocation20_spill] sm:$0xff] }
 0x116   :  { %757 = vmatpush.msrb.mxu0 %v1935_v39  ;;  %v2154_v26 = vpop.f32.mrf.mxu2 }
 0x117   :  { %833 = vmatpush.msrb.mxu1 %v1798_v13  ;;  %853 = vmatpush.msrb.mxu2 %v1853_v60  ;;  %v2632_v13 = vld [vmem:[#allocation24_spill] sm:$0xff] }
 0x118   :  { %758 = vmatpush.msrb.mxu0 %v1941_v41 }
 0x119   :  { %834 = vmatpush.msrb.mxu1 %v1801_v16  ;;  %854 = vmatpush.msrb.mxu2 %v1858_v62  ;;  %v2633_v16 = vld [vmem:[#allocation18_spill] sm:$0xff] }
 0x11a   :  { %759 = vmatpush.msrb.mxu0 %v1947_v43  ;;  %2642 = vst [vmem:[#allocation18_spill] sm:$0xff] %v2154_v26 }
 0x11b   :  { %835 = vmatpush.msrb.mxu1 %v1804_v19  ;;  %855 = vmatpush.msrb.mxu2 %v1863_v3  ;;  %v2634_v19 = vld [vmem:[#allocation21_spill] sm:$0xff] }
 0x11c   :  { %760 = vmatpush.msrb.mxu0 %v1953_v44 }
 0x11d   :  { %836 = vmatpush.msrb.mxu1 %v1807_v22  ;;  %856 = vmatpush.msrb.mxu2 %v1868_v6  ;;  %v167_v22 = vpop.f32.mrf.mxu0 }
 0x11e   :  { %761 = vmatpush.msrb.mxu0 %v1959_v46  ;;  %v2160_v55 = vpop.f32.mrf.mxu2  ;;  %v168_v57 = vadd.f32 %v167_v22, %v2649_v17 }
 0x11f   :  { %837 = vmatpush.msrb.mxu1 %v1810_v25  ;;  %857 = vmatpush.msrb.mxu2 %v1873_v10  ;;  %v211_v25 = vpop.f32.mrf.mxu1  ;;  %2645 = vst [vmem:[#allocation28_spill] sm:$0xff] %v2160_v55 }
 0x120   :  { %762 = vmatpush.msrb.mxu0 %v1965_v47  ;;  %v212_v8 = vadd.f32 %v211_v25, %v2650_v63 }
 0x121   :  { %838 = vmatpush.msrb.mxu1 %v1813_v28  ;;  %858 = vmatpush.msrb.mxu2 %v1878_v12 }
 0x122   :  { %763 = vmatpush.msrb.mxu0 %v1971_v48 }
 0x123   :  { %839 = vmatpush.msrb.mxu1 %v1816_v31  ;;  %859 = vmatpush.msrb.mxu2 %v1883_v15 }
 0x124   :  { %764 = vmatpush.msrb.mxu0 %v2626_v0 }
 0x125   :  { %840 = vmatpush.msrb.mxu1 %v2627_v1  ;;  %860 = vmatpush.msrb.mxu2 %v2628_v2  ;;  %v2130_v28 = vpop.f32.mrf.mxu0 }
 0x126   :  { %765 = vmatpush.msrb.mxu0 %v2629_v4  ;;  %v2166_v50 = vpop.f32.mrf.mxu2 }
 0x127   :  { %841 = vmatpush.msrb.mxu1 %v2630_v7  ;;  %861 = vmatpush.msrb.mxu2 %v2631_v9  ;;  %v2132_v31 = vpop.f32.mrf.mxu1  ;;  %2648 = vst [vmem:[#allocation31_spill] sm:$0xff] %v2166_v50 }
 0x128   :  { %766 = vmatpush.msrb.mxu0 %v2632_v13 }
 0x129   :  { %842 = vmatpush.msrb.mxu1 %v2633_v16  ;;  %862 = vmatpush.msrb.mxu2 %v2634_v19 }
 0x12d   :  { %v2134_v34 = vpop.f32.mrf.mxu0 }
 0x12f   :  { %v2136_v37 = vpop.f32.mrf.mxu1 }
 0x135   :  { %v2138_v18 = vpop.f32.mrf.mxu0 }
 0x136   :  { %2635 = vst [vmem:[#allocation22_spill] sm:$0xff] %v2138_v18 }
 0x137   :  { %v2140_v21 = vpop.f32.mrf.mxu1 }
 0x138   :  { %2636 = vst [vmem:[#allocation16_spill] sm:$0xff] %v2140_v21 }
 0x13d   :  { %v2144_v52 = vpop.f32.mrf.mxu0 }
 0x13e   :  { %2637 = vst [vmem:[#allocation19_spill] sm:$0xff] %v2144_v52 }
 0x13f   :  { %v2146_v54 = vpop.f32.mrf.mxu1 }
 0x140   :  { %2638 = vst [vmem:[#allocation23_spill] sm:$0xff] %v2146_v54 }
 0x145   :  { %v2150_v20 = vpop.f32.mrf.mxu0 }
 0x146   :  { %2640 = vst [vmem:[#allocation20_spill] sm:$0xff] %v2150_v20 }
 0x147   :  { %v2152_v14 = vpop.f32.mrf.mxu1 }
 0x148   :  { %2641 = vst [vmem:[#allocation24_spill] sm:$0xff] %v2152_v14 }
 0x14d   :  { %v2156_v29 = vpop.f32.mrf.mxu0 }
 0x14e   :  { %2643 = vst [vmem:[#allocation21_spill] sm:$0xff] %v2156_v29 }
 0x14f   :  { %v2158_v32 = vpop.f32.mrf.mxu1 }
 0x150   :  { %2644 = vst [vmem:[#allocation27_spill] sm:$0xff] %v2158_v32  ;;  %v2170_v32 = vpop.f32.mrf.mxu2 }
 0x151   :  { %2651 = vst [vmem:[#allocation32_spill] sm:$0xff] %v2170_v32 }
 0x155   :  { %v2162_v5 = vpop.f32.mrf.mxu0 }
 0x156   :  { %2646 = vst [vmem:[#allocation29_spill] sm:$0xff] %v2162_v5 }
 0x157   :  { %v2164_v59 = vpop.f32.mrf.mxu1 }
 0x158   :  { %2647 = vst [vmem:[#allocation30_spill] sm:$0xff] %v2164_v59  ;;  %v2172_v50 = vpop.f32.mrf.mxu2 }
 0x159   :  { %2652 = vst [vmem:[#allocation33_spill] sm:$0xff] %v2172_v50 }
 0x186   :  { %v496_v1 = vpop.f32.mrf.mxu0  ;;  %v516_v7 = vpop.f32.mrf.mxu1 }
 0x187   :  { %v539_v16 = vadd.f32 %v496_v1, %v168_v57  ;;  %v559_v20 = vadd.f32 %v516_v7, %v212_v8 }
 0x189   :  { %v1432_v14 = vmul.f32 -1.442695, %v539_v16  ;;  %v1433_v29 = vmul.f32 -1.442695, %v559_v20 }
 0x18b   :  { %1469 = vpow2.f32 %v1432_v14 }
 0x18c   :  { %1471 = vpow2.f32 %v1433_v29 }
 0x18d   :  { %v536_v29 = vpop.f32.mrf.mxu2 }
 0x18e   :  { %v579_v50 = vadd.f32 %v2070_v61, %v536_v29 }
 0x191   :  { %v1470_v55 = vpop.eup %1469 }
 0x192   :  { %v1472_v5 = vpop.eup %1471  ;;  %v543_v54 = vadd.f32 1.0, %v1470_v55 }
 0x193   :  { %v563_v59 = vadd.f32 1.0, %v1472_v5 }
 0x194   :  { %1473 = vrcp.f32 %v543_v54  ;;  %v555_v1 = vand.u32 2147483648, %v543_v54  ;;  %v553_v14 = vand.u32 2147483647, %v543_v54  ;;  %vm549_vm9 = vweird.f32 %v543_v54 }
 0x195   :  { %1475 = vrcp.f32 %v563_v59  ;;  %vm569_vm13 = vweird.f32 %v563_v59 }
 0x196   :  { %v556_v55 = vor.u32 1.1754944e-38, %v555_v1  ;;  %vm554_vm11 = vcmp.eq.f32.partialorder %v553_v14, 8.507059e+37 }
 0x19a   :  { %v1474_v22 = vpop.eup %1473 }
 0x19b   :  { %v1476_v25 = vpop.eup %1475  ;;  %v545_v52 = vmul.f32 %v1474_v22, %v543_v54  ;;  %vm550_vm8 = vweird.f32 %v1474_v22 }
 0x19c   :  { %v565_v26 = vmul.f32 %v1476_v25, %v563_v59  ;;  %vm551_vm10 = vmor %vm549_vm9, %vm550_vm8  ;;  %vm570_vm12 = vweird.f32 %v1476_v25 }
 0x19d   :  { %v546_v57 = vsub.f32 1.0, %v545_v52  ;;  %v256_v52 = vadd.f32 %v255_v40, %v2072_v11  ;;  %vm571_vm14 = vmor %vm569_vm13, %vm570_vm12  ;;  %v2184_v40 = vld [vmem:[#allocation8 + $0x168] sm:$0xff] }
 0x19e   :  { %v566_v8 = vsub.f32 1.0, %v565_v26  ;;  %v575_v26 = vand.u32 2147483648, %v563_v59 }
 0x19f   :  { %v547_v20 = vmul.f32 %v1474_v22, %v546_v57  ;;  %v573_v57 = vand.u32 2147483647, %v563_v59  ;;  %v171_v59 = vadd.f32 %v2130_v28, %v2649_v17 }
 0x1a0   :  { %v567_v7 = vmul.f32 %v1476_v25, %v566_v8 }
 0x1a1   :  { %v548_v16 = vadd.f32 %v1474_v22, %v547_v20  ;;  %v576_v20 = vor.u32 1.1754944e-38, %v575_v26  ;;  %vm574_vm15 = vcmp.eq.f32.partialorder %v573_v57, 8.507059e+37 }
 0x1a2   :  { %v568_v32 = vadd.f32 %v1476_v25, %v567_v7 }
 0x1a3   :  { %v552_v5 = vsel %vm551_vm10, %v1474_v22, %v548_v16 }
 0x1a4   :  { %v557_v21 = vsel %vm554_vm11, %v556_v55, %v552_v5  ;;  %v572_v23 = vsel %vm571_vm14, %v1476_v25, %v568_v32 }
 0x1a5   :  { %v580_v18 = vmul.f32 %v579_v50, %v557_v21  ;;  %v577_v54 = vsel %vm574_vm15, %v576_v20, %v572_v23  ;;  %v2199_v21 = vld [vmem:[#allocation8 + $0x120] sm:$0xff] }
 0x1a6   :  { %v583_v22 = vsub.f32 1.0, %v577_v54  ;;  %v585_v7 = vmul.f32 %v577_v54, %v2076_v51  ;;  %v2189_v51 = vld [vmem:[#allocation8 + $0x150] sm:$0xff] }
 0x1a7   :  { %v581_v8 = vadd.f32 %v580_v18, %v256_v52  ;;  %v2194_v18 = vld [vmem:[#allocation8 + $0x138] sm:$0xff] }
 0x1a9   :  { %1477 = vtanh.f32 %v581_v8 }
 0x1af   :  { %v1478_v1 = vpop.eup %1477 }
 0x1b0   :  { %v584_v14 = vmul.f32 %v1478_v1, %v583_v22 }
 0x1b2   :  { %v2177_v29 = vadd.f32 %v585_v7, %v584_v14 }
 0x1b4   :  { %588 = vst [vmem:[#allocation11 + $0x8] sm:$0xff] %v2177_v29  ;;  %611 = vmatmul.f32.vlgmr.msrb.gmra.mxu3 %v2177_v29  ;;  %631 = vmatmul.f32.vlgmr.msra.gmra.mxu0 %v2177_v29 }
 0x1b5   :  { %651 = vmatmul.f32.vlgmr.msra.gmra.mxu1 %v2177_v29  ;;  %867 = vmatpush.msrb.mxu3 %v1903_v27 }
 0x1b6   :  { %943 = vmatpush.msra.mxu0 %v2184_v40  ;;  %963 = vmatpush.msra.mxu1 %v1828_v42  ;;  %v2204_v42 = vld [vmem:[#allocation8 + $0x108] sm:$0xff] }
 0x1b7   :  { %868 = vmatpush.msrb.mxu3 %v1909_v30 }
 0x1b8   :  { %944 = vmatpush.msra.mxu0 %v2189_v51  ;;  %964 = vmatpush.msra.mxu1 %v1831_v45  ;;  %v2209_v45 = vld [vmem:[#allocation8 + $0xf0] sm:$0xff] }
 0x1b9   :  { %869 = vmatpush.msrb.mxu3 %v1913_v33 }
 0x1ba   :  { %945 = vmatpush.msra.mxu0 %v2194_v18  ;;  %965 = vmatpush.msra.mxu1 %v1836_v49  ;;  %v2214_v49 = vld [vmem:[#allocation8 + $0xd8] sm:$0xff] }
 0x1bb   :  { %870 = vmatpush.msrb.mxu3 %v1918_v35 }
 0x1bc   :  { %946 = vmatpush.msra.mxu0 %v2199_v21  ;;  %966 = vmatpush.msra.mxu1 %v1840_v53  ;;  %v2219_v53 = vld [vmem:[#allocation8 + $0xc0] sm:$0xff] }
 0x1bd   :  { %871 = vmatpush.msrb.mxu3 %v1923_v36 }
 0x1be   :  { %947 = vmatpush.msra.mxu0 %v2204_v42  ;;  %967 = vmatpush.msra.mxu1 %v1844_v56  ;;  %v2224_v56 = vld [vmem:[#allocation8 + $0xa8] sm:$0xff] }
 0x1bf   :  { %872 = vmatpush.msrb.mxu3 %v1929_v38 }
 0x1c0   :  { %948 = vmatpush.msra.mxu0 %v2209_v45  ;;  %968 = vmatpush.msra.mxu1 %v1848_v58  ;;  %v2229_v58 = vld [vmem:[#allocation8 + $0x90] sm:$0xff] }
 0x1c1   :  { %873 = vmatpush.msrb.mxu3 %v1935_v39 }
 0x1c2   :  { %949 = vmatpush.msra.mxu0 %v2214_v49  ;;  %969 = vmatpush.msra.mxu1 %v1853_v60  ;;  %v2234_v60 = vld [vmem:[#allocation8 + $0x78] sm:$0xff] }
 0x1c3   :  { %874 = vmatpush.msrb.mxu3 %v1941_v41 }
 0x1c4   :  { %950 = vmatpush.msra.mxu0 %v2219_v53  ;;  %970 = vmatpush.msra.mxu1 %v1858_v62  ;;  %v2239_v62 = vld [vmem:[#allocation8 + $0x60] sm:$0xff] }
 0x1c5   :  { %875 = vmatpush.msrb.mxu3 %v1947_v43 }
 0x1c6   :  { %951 = vmatpush.msra.mxu0 %v2224_v56  ;;  %971 = vmatpush.msra.mxu1 %v1863_v3  ;;  %v2244_v3 = vld [vmem:[#allocation8 + $0x48] sm:$0xff] }
 0x1c7   :  { %876 = vmatpush.msrb.mxu3 %v1953_v44 }
 0x1c8   :  { %952 = vmatpush.msra.mxu0 %v2229_v58  ;;  %972 = vmatpush.msra.mxu1 %v1868_v6  ;;  %v2249_v6 = vld [vmem:[#allocation8 + $0x30] sm:$0xff] }
 0x1c9   :  { %877 = vmatpush.msrb.mxu3 %v1959_v46  ;;  %2653 = vst [vmem:[#allocation34_spill] sm:$0xff] %v2249_v6 }
 0x1ca   :  { %953 = vmatpush.msra.mxu0 %v2234_v60  ;;  %973 = vmatpush.msra.mxu1 %v1873_v10  ;;  %v2254_v10 = vld [vmem:[#allocation8 + $0x18] sm:$0xff] }
 0x1cb   :  { %878 = vmatpush.msrb.mxu3 %v1965_v47  ;;  %2654 = vst [vmem:[#allocation35_spill] sm:$0xff] %v2254_v10 }
 0x1cc   :  { %954 = vmatpush.msra.mxu0 %v2239_v62  ;;  %974 = vmatpush.msra.mxu1 %v1878_v12  ;;  %v2259_v12 = vld [vmem:[#allocation8] sm:$0xff] }
 0x1cd   :  { %879 = vmatpush.msrb.mxu3 %v1971_v48  ;;  %2655 = vst [vmem:[#allocation36_spill] sm:$0xff] %v2259_v12 }
 0x1ce   :  { %955 = vmatpush.msra.mxu0 %v2244_v3  ;;  %975 = vmatpush.msra.mxu1 %v1883_v15  ;;  %v215_v15 = vadd.f32 %v2132_v31, %v2650_v63 }
 0x1cf   :  { %880 = vmatpush.msrb.mxu3 %v2626_v0 }
 0x1d0   :  { %956 = vmatpush.msra.mxu0 %v2249_v6  ;;  %976 = vmatpush.msra.mxu1 %v2628_v2 }
 0x1d1   :  { %881 = vmatpush.msrb.mxu3 %v2629_v4 }
 0x1d2   :  { %957 = vmatpush.msra.mxu0 %v2254_v10  ;;  %977 = vmatpush.msra.mxu1 %v2631_v9 }
 0x1d3   :  { %882 = vmatpush.msrb.mxu3 %v2632_v13 }
 0x1d4   :  { %958 = vmatpush.msra.mxu0 %v2259_v12  ;;  %978 = vmatpush.msra.mxu1 %v2634_v19 }
 0x231   :  { %v632_v2 = vpop.f32.mrf.mxu0 }
 0x232   :  { %v675_v23 = vadd.f32 %v632_v2, %v215_v15  ;;  %v652_v14 = vpop.f32.mrf.mxu1 }
 0x233   :  { %v695_v2 = vadd.f32 %v2070_v61, %v652_v14 }
 0x234   :  { %v1435_v32 = vmul.f32 -1.442695, %v675_v23 }
 0x236   :  { %1479 = vpow2.f32 %v1435_v32 }
 0x237   :  { %v612_v50 = vpop.f32.mrf.mxu3 }
 0x238   :  { %v655_v9 = vadd.f32 %v612_v50, %v171_v59  ;;  %v259_v50 = vadd.f32 %v2142_v24, %v2072_v11  ;;  %v2279_v24 = vld [vmem:[#allocation8 + $0x170] sm:$0xff] }
 0x23a   :  { %v1434_v25 = vmul.f32 -1.442695, %v655_v9 }
 0x23c   :  { %v1480_v16 = vpop.eup %1479  ;;  %1481 = vpow2.f32 %v1434_v25 }
 0x23d   :  { %v679_v55 = vadd.f32 1.0, %v1480_v16 }
 0x23f   :  { %1483 = vrcp.f32 %v679_v55  ;;  %v691_v9 = vand.u32 2147483648, %v679_v55  ;;  %vm685_vm5 = vweird.f32 %v679_v55  ;;  %v689_v16 = vand.u32 2147483647, %v679_v55 }
 0x241   :  { %vm690_vm7 = vcmp.eq.f32.partialorder %v689_v16, 8.507059e+37 }
 0x242   :  { %v1482_v5 = vpop.eup %1481 }
 0x243   :  { %v659_v52 = vadd.f32 1.0, %v1482_v5 }
 0x245   :  { %1485 = vrcp.f32 %v659_v52  ;;  %v1484_v19 = vpop.eup %1483  ;;  %v671_v54 = vand.u32 2147483648, %v659_v52  ;;  %v669_v28 = vand.u32 2147483647, %v659_v52  ;;  %vm665_vm1 = vweird.f32 %v659_v52 }
 0x246   :  { %v681_v26 = vmul.f32 %v1484_v19, %v679_v55  ;;  %vm686_vm4 = vweird.f32 %v1484_v19  ;;  %v2289_v55 = vld [vmem:[#allocation8 + $0x140] sm:$0xff] }
 0x247   :  { %v672_v15 = vor.u32 1.1754944e-38, %v671_v54  ;;  %vm670_vm3 = vcmp.eq.f32.partialorder %v669_v28, 8.507059e+37  ;;  %vm687_vm6 = vmor %vm685_vm5, %vm686_vm4 }
 0x248   :  { %v682_v8 = vsub.f32 1.0, %v681_v26 }
 0x24a   :  { %v683_v1 = vmul.f32 %v1484_v19, %v682_v8 }
 0x24b   :  { %v1486_v31 = vpop.eup %1485 }
 0x24c   :  { %v661_v57 = vmul.f32 %v1486_v31, %v659_v52  ;;  %vm666_vm0 = vweird.f32 %v1486_v31  ;;  %v684_v32 = vadd.f32 %v1484_v19, %v683_v1  ;;  %v692_v52 = vor.u32 1.1754944e-38, %v691_v9 }
 0x24d   :  { %vm667_vm2 = vmor %vm665_vm1, %vm666_vm0 }
 0x24e   :  { %v662_v20 = vsub.f32 1.0, %v661_v57  ;;  %v688_v26 = vsel %vm687_vm6, %v1484_v19, %v684_v32 }
 0x24f   :  { %v693_v57 = vsel %vm690_vm7, %v692_v52, %v688_v26 }
 0x250   :  { %v663_v22 = vmul.f32 %v1486_v31, %v662_v20  ;;  %v699_v8 = vsub.f32 1.0, %v693_v57  ;;  %v701_v54 = vmul.f32 %v693_v57, %v2177_v29  ;;  %v2284_v29 = vld [vmem:[#allocation8 + $0x158] sm:$0xff] }
 0x252   :  { %v664_v7 = vadd.f32 %v1486_v31, %v663_v22 }
 0x254   :  { %v668_v23 = vsel %vm667_vm2, %v1486_v31, %v664_v7 }
 0x255   :  { %v673_v59 = vsel %vm670_vm3, %v672_v15, %v668_v23 }
 0x256   :  { %v696_v25 = vmul.f32 %v695_v2, %v673_v59 }
 0x258   :  { %v697_v5 = vadd.f32 %v696_v25, %v259_v50 }
 0x25a   :  { %1487 = vtanh.f32 %v697_v5 }
 0x260   :  { %v1488_v31 = vpop.eup %1487 }
 0x261   :  { %v700_v20 = vmul.f32 %v1488_v31, %v699_v8 }
 0x263   :  { %v2271_v22 = vadd.f32 %v701_v54, %v700_v20 }
 0x265   :  { %704 = vst [vmem:[#allocation11 + $0x10] sm:$0xff] %v2271_v22  ;;  %727 = vmatmul.f32.vlgmr.msra.gmra.mxu2 %v2271_v22  ;;  %747 = vmatmul.f32.vlgmr.msra.gmra.mxu3 %v2271_v22 }
 0x266   :  { %767 = vmatmul.f32.vlgmr.msrb.gmra.mxu0 %v2271_v22  ;;  %983 = vmatpush.msra.mxu2 %v1903_v27  ;;  %v2294_v27 = vld [vmem:[#allocation8 + $0x128] sm:$0xff] }
 0x267   :  { %1059 = vmatpush.msra.mxu3 %v2184_v40  ;;  %1079 = vmatpush.msrb.mxu0 %v2279_v24 }
 0x268   :  { %984 = vmatpush.msra.mxu2 %v1909_v30  ;;  %v2299_v30 = vld [vmem:[#allocation8 + $0x110] sm:$0xff] }
 0x269   :  { %1060 = vmatpush.msra.mxu3 %v2189_v51  ;;  %1080 = vmatpush.msrb.mxu0 %v2284_v29 }
 0x26a   :  { %985 = vmatpush.msra.mxu2 %v1913_v33  ;;  %v2304_v33 = vld [vmem:[#allocation8 + $0xf8] sm:$0xff] }
 0x26b   :  { %1061 = vmatpush.msra.mxu3 %v2194_v18  ;;  %1081 = vmatpush.msrb.mxu0 %v2289_v55 }
 0x26c   :  { %986 = vmatpush.msra.mxu2 %v1918_v35  ;;  %v2309_v35 = vld [vmem:[#allocation8 + $0xe0] sm:$0xff] }
 0x26d   :  { %1062 = vmatpush.msra.mxu3 %v2199_v21  ;;  %1082 = vmatpush.msrb.mxu0 %v2294_v27 }
 0x26e   :  { %987 = vmatpush.msra.mxu2 %v1923_v36  ;;  %v2314_v36 = vld [vmem:[#allocation8 + $0xc8] sm:$0xff] }
 0x26f   :  { %1063 = vmatpush.msra.mxu3 %v2204_v42  ;;  %1083 = vmatpush.msrb.mxu0 %v2299_v30 }
 0x270   :  { %988 = vmatpush.msra.mxu2 %v1929_v38  ;;  %v2319_v38 = vld [vmem:[#allocation8 + $0xb0] sm:$0xff] }
 0x271   :  { %1064 = vmatpush.msra.mxu3 %v2209_v45  ;;  %1084 = vmatpush.msrb.mxu0 %v2304_v33 }
 0x272   :  { %989 = vmatpush.msra.mxu2 %v1935_v39  ;;  %v2324_v39 = vld [vmem:[#allocation8 + $0x98] sm:$0xff] }
 0x273   :  { %1065 = vmatpush.msra.mxu3 %v2214_v49  ;;  %1085 = vmatpush.msrb.mxu0 %v2309_v35 }
 0x274   :  { %990 = vmatpush.msra.mxu2 %v1941_v41  ;;  %v2329_v41 = vld [vmem:[#allocation8 + $0x80] sm:$0xff] }
 0x275   :  { %1066 = vmatpush.msra.mxu3 %v2219_v53  ;;  %1086 = vmatpush.msrb.mxu0 %v2314_v36 }
 0x276   :  { %991 = vmatpush.msra.mxu2 %v1947_v43  ;;  %v2334_v43 = vld [vmem:[#allocation8 + $0x68] sm:$0xff] }
 0x277   :  { %1067 = vmatpush.msra.mxu3 %v2224_v56  ;;  %1087 = vmatpush.msrb.mxu0 %v2319_v38 }
 0x278   :  { %992 = vmatpush.msra.mxu2 %v1953_v44  ;;  %v2339_v44 = vld [vmem:[#allocation8 + $0x50] sm:$0xff] }
 0x279   :  { %1068 = vmatpush.msra.mxu3 %v2229_v58  ;;  %1088 = vmatpush.msrb.mxu0 %v2324_v39 }
 0x27a   :  { %993 = vmatpush.msra.mxu2 %v1959_v46  ;;  %v2344_v46 = vld [vmem:[#allocation8 + $0x38] sm:$0xff] }
 0x27b   :  { %1069 = vmatpush.msra.mxu3 %v2234_v60  ;;  %1089 = vmatpush.msrb.mxu0 %v2329_v41  ;;  %2656 = vst [vmem:[#allocation37_spill] sm:$0xff] %v2344_v46 }
 0x27c   :  { %994 = vmatpush.msra.mxu2 %v1965_v47  ;;  %v2349_v47 = vld [vmem:[#allocation8 + $0x20] sm:$0xff] }
 0x27d   :  { %1070 = vmatpush.msra.mxu3 %v2239_v62  ;;  %1090 = vmatpush.msrb.mxu0 %v2334_v43  ;;  %2657 = vst [vmem:[#allocation38_spill] sm:$0xff] %v2349_v47 }
 0x27e   :  { %995 = vmatpush.msra.mxu2 %v1971_v48  ;;  %v2354_v48 = vld [vmem:[#allocation8 + $0x8] sm:$0xff] }
 0x27f   :  { %1071 = vmatpush.msra.mxu3 %v2244_v3  ;;  %1091 = vmatpush.msrb.mxu0 %v2339_v44  ;;  %2658 = vst [vmem:[#allocation39_spill] sm:$0xff] %v2354_v48 }
 0x280   :  { %996 = vmatpush.msra.mxu2 %v2626_v0  ;;  %v174_v0 = vadd.f32 %v2134_v34, %v2649_v17 }
 0x281   :  { %1072 = vmatpush.msra.mxu3 %v2249_v6  ;;  %1092 = vmatpush.msrb.mxu0 %v2344_v46 }
 0x282   :  { %997 = vmatpush.msra.mxu2 %v2629_v4  ;;  %v218_v4 = vadd.f32 %v2136_v37, %v2650_v63 }
 0x283   :  { %1073 = vmatpush.msra.mxu3 %v2254_v10  ;;  %1093 = vmatpush.msrb.mxu0 %v2349_v47 }
 0x284   :  { %998 = vmatpush.msra.mxu2 %v2632_v13 }
 0x285   :  { %1074 = vmatpush.msra.mxu3 %v2259_v12  ;;  %1094 = vmatpush.msrb.mxu0 %v2354_v48 }
 0x2e3   :  { %v768_v52 = vpop.f32.mrf.mxu0 }
 0x2e4   :  { %v811_v20 = vadd.f32 %v2070_v61, %v768_v52  ;;  %v2401_v52 = vld [vmem:[#allocation8 + $0xe8] sm:$0xff] }
 0x2e8   :  { %v728_v19 = vpop.f32.mrf.mxu2  ;;  %v748_v28 = vpop.f32.mrf.mxu3 }
 0x2e9   :  { %v771_v1 = vadd.f32 %v728_v19, %v174_v0  ;;  %v791_v14 = vadd.f32 %v748_v28, %v218_v4  ;;  %v2659_v19 = vld [vmem:[#allocation17_spill] sm:$0xff] }
 0x2ea   :  { %v262_v28 = vadd.f32 %v2659_v19, %v2072_v11  ;;  %v2441_v19 = vld [vmem:[#allocation8 + $0x28] sm:$0xff] }
 0x2eb   :  { %v1436_v7 = vmul.f32 -1.442695, %v771_v1  ;;  %v1437_v15 = vmul.f32 -1.442695, %v791_v14  ;;  %2661 = vst [vmem:[#allocation40_spill] sm:$0xff] %v2441_v19 }
 0x2ed   :  { %1489 = vpow2.f32 %v1436_v7 }
 0x2ee   :  { %1491 = vpow2.f32 %v1437_v15 }
 0x2f3   :  { %v1490_v13 = vpop.eup %1489 }
 0x2f4   :  { %v1492_v2 = vpop.eup %1491  ;;  %v775_v23 = vadd.f32 1.0, %v1490_v13 }
 0x2f5   :  { %v795_v32 = vadd.f32 1.0, %v1492_v2 }
 0x2f6   :  { %1493 = vrcp.f32 %v775_v23  ;;  %v787_v37 = vand.u32 2147483648, %v775_v23  ;;  %v785_v26 = vand.u32 2147483647, %v775_v23  ;;  %vm781_vm9 = vweird.f32 %v775_v23 }
 0x2f7   :  { %1495 = vrcp.f32 %v795_v32  ;;  %v807_v14 = vand.u32 2147483648, %v795_v32  ;;  %vm801_vm13 = vweird.f32 %v795_v32  ;;  %v805_v7 = vand.u32 2147483647, %v795_v32 }
 0x2f8   :  { %v788_v31 = vor.u32 1.1754944e-38, %v787_v37  ;;  %vm786_vm11 = vcmp.eq.f32.partialorder %v785_v26, 8.507059e+37  ;;  %v2396_v26 = vld [vmem:[#allocation8 + $0x100] sm:$0xff] }
 0x2f9   :  { %v808_v2 = vor.u32 1.1754944e-38, %v807_v14  ;;  %vm806_vm15 = vcmp.eq.f32.partialorder %v805_v7, 8.507059e+37 }
 0x2fc   :  { %v1494_v59 = vpop.eup %1493 }
 0x2fd   :  { %v1496_v50 = vpop.eup %1495  ;;  %v777_v34 = vmul.f32 %v1494_v59, %v775_v23  ;;  %vm782_vm8 = vweird.f32 %v1494_v59 }
 0x2fe   :  { %v797_v9 = vmul.f32 %v1496_v50, %v795_v32  ;;  %vm783_vm10 = vmor %vm781_vm9, %vm782_vm8  ;;  %vm802_vm12 = vweird.f32 %v1496_v50  ;;  %v2371_v32 = vld [vmem:[#allocation8 + $0x178] sm:$0xff] }
 0x2ff   :  { %v778_v25 = vsub.f32 1.0, %v777_v34  ;;  %vm803_vm14 = vmor %vm801_vm13, %vm802_vm12 }
 0x300   :  { %v798_v16 = vsub.f32 1.0, %v797_v9 }
 0x301   :  { %v779_v5 = vmul.f32 %v1494_v59, %v778_v25 }
 0x302   :  { %v799_v57 = vmul.f32 %v1496_v50, %v798_v16  ;;  %v2386_v16 = vld [vmem:[#allocation8 + $0x130] sm:$0xff] }
 0x303   :  { %v780_v8 = vadd.f32 %v1494_v59, %v779_v5  ;;  %v2391_v5 = vld [vmem:[#allocation8 + $0x118] sm:$0xff] }
 0x304   :  { %v800_v4 = vadd.f32 %v1496_v50, %v799_v57  ;;  %v2406_v57 = vld [vmem:[#allocation8 + $0xd0] sm:$0xff] }
 0x305   :  { %v784_v54 = vsel %vm783_vm10, %v1494_v59, %v780_v8  ;;  %v2411_v8 = vld [vmem:[#allocation8 + $0xb8] sm:$0xff] }
 0x306   :  { %v789_v0 = vsel %vm786_vm11, %v788_v31, %v784_v54  ;;  %v804_v13 = vsel %vm803_vm14, %v1496_v50, %v800_v4  ;;  %v2376_v50 = vld [vmem:[#allocation8 + $0x160] sm:$0xff]  ;;  %v2426_v54 = vld [vmem:[#allocation8 + $0x70] sm:$0xff] }
 0x307   :  { %v812_v1 = vmul.f32 %v811_v20, %v789_v0  ;;  %v809_v23 = vsel %vm806_vm15, %v808_v2, %v804_v13  ;;  %v2416_v31 = vld [vmem:[#allocation8 + $0xa0] sm:$0xff]  ;;  %v2421_v20 = vld [vmem:[#allocation8 + $0x88] sm:$0xff]  ;;  %v2431_v0 = vld [vmem:[#allocation8 + $0x58] sm:$0xff] }
 0x308   :  { %v815_v34 = vsub.f32 1.0, %v809_v23  ;;  %v817_v25 = vmul.f32 %v809_v23, %v2271_v22  ;;  %v2381_v22 = vld [vmem:[#allocation8 + $0x148] sm:$0xff]  ;;  %v2436_v4 = vld [vmem:[#allocation8 + $0x40] sm:$0xff] }
 0x309   :  { %v813_v15 = vadd.f32 %v812_v1, %v262_v28  ;;  %2660 = vst [vmem:[#allocation17_spill] sm:$0xff] %v2436_v4  ;;  %v2446_v28 = vld [vmem:[#allocation8 + $0x10] sm:$0xff]  ;;  %v2663_v1 = vld [vmem:[#allocation22_spill] sm:$0xff] }
 0x30a   :  { %2662 = vst [vmem:[#allocation41_spill] sm:$0xff] %v2446_v28  ;;  %v177_v14 = vadd.f32 %v2663_v1, %v2649_v17  ;;  %v2664_v2 = vld [vmem:[#allocation16_spill] sm:$0xff] }
 0x30b   :  { %1497 = vtanh.f32 %v813_v15  ;;  %v221_v23 = vadd.f32 %v2664_v2, %v2650_v63 }
 0x311   :  { %v1498_v59 = vpop.eup %1497 }
 0x312   :  { %v816_v9 = vmul.f32 %v1498_v59, %v815_v34 }
 0x314   :  { %v2365_v37 = vadd.f32 %v817_v25, %v816_v9 }
 0x316   :  { %820 = vst [vmem:[#allocation11 + $0x18] sm:$0xff] %v2365_v37  ;;  %843 = vmatmul.f32.vlgmr.msrb.gmra.mxu1 %v2365_v37  ;;  %863 = vmatmul.f32.vlgmr.msrb.gmra.mxu2 %v2365_v37 }
 0x317   :  { %883 = vmatmul.f32.vlgmr.msrb.gmra.mxu3 %v2365_v37  ;;  %1099 = vmatpush.msrb.mxu1 %v2371_v32 }
 0x318   :  { %1175 = vmatpush.msrb.mxu2 %v2184_v40  ;;  %1195 = vmatpush.msrb.mxu3 %v2279_v24 }
 0x319   :  { %1100 = vmatpush.msrb.mxu1 %v2376_v50 }
 0x31a   :  { %1176 = vmatpush.msrb.mxu2 %v2189_v51  ;;  %1196 = vmatpush.msrb.mxu3 %v2284_v29 }
 0x31b   :  { %1101 = vmatpush.msrb.mxu1 %v2381_v22 }
 0x31c   :  { %1177 = vmatpush.msrb.mxu2 %v2194_v18  ;;  %1197 = vmatpush.msrb.mxu3 %v2289_v55 }
 0x31d   :  { %1102 = vmatpush.msrb.mxu1 %v2386_v16 }
 0x31e   :  { %1178 = vmatpush.msrb.mxu2 %v2199_v21  ;;  %1198 = vmatpush.msrb.mxu3 %v2294_v27 }
 0x31f   :  { %1103 = vmatpush.msrb.mxu1 %v2391_v5 }
 0x320   :  { %1179 = vmatpush.msrb.mxu2 %v2204_v42  ;;  %1199 = vmatpush.msrb.mxu3 %v2299_v30 }
 0x321   :  { %1104 = vmatpush.msrb.mxu1 %v2396_v26 }
 0x322   :  { %1180 = vmatpush.msrb.mxu2 %v2209_v45  ;;  %1200 = vmatpush.msrb.mxu3 %v2304_v33 }
 0x323   :  { %1105 = vmatpush.msrb.mxu1 %v2401_v52 }
 0x324   :  { %1181 = vmatpush.msrb.mxu2 %v2214_v49  ;;  %1201 = vmatpush.msrb.mxu3 %v2309_v35 }
 0x325   :  { %1106 = vmatpush.msrb.mxu1 %v2406_v57 }
 0x326   :  { %1182 = vmatpush.msrb.mxu2 %v2219_v53  ;;  %1202 = vmatpush.msrb.mxu3 %v2314_v36 }
 0x327   :  { %1107 = vmatpush.msrb.mxu1 %v2411_v8 }
 0x328   :  { %1183 = vmatpush.msrb.mxu2 %v2224_v56  ;;  %1203 = vmatpush.msrb.mxu3 %v2319_v38 }
 0x329   :  { %1108 = vmatpush.msrb.mxu1 %v2416_v31 }
 0x32a   :  { %1184 = vmatpush.msrb.mxu2 %v2229_v58  ;;  %1204 = vmatpush.msrb.mxu3 %v2324_v39 }
 0x32b   :  { %1109 = vmatpush.msrb.mxu1 %v2421_v20 }
 0x32c   :  { %1185 = vmatpush.msrb.mxu2 %v2234_v60  ;;  %1205 = vmatpush.msrb.mxu3 %v2329_v41 }
 0x32d   :  { %1110 = vmatpush.msrb.mxu1 %v2426_v54 }
 0x32e   :  { %1186 = vmatpush.msrb.mxu2 %v2239_v62  ;;  %1206 = vmatpush.msrb.mxu3 %v2334_v43 }
 0x32f   :  { %1111 = vmatpush.msrb.mxu1 %v2431_v0 }
 0x330   :  { %1187 = vmatpush.msrb.mxu2 %v2244_v3  ;;  %1207 = vmatpush.msrb.mxu3 %v2339_v44 }
 0x331   :  { %1112 = vmatpush.msrb.mxu1 %v2436_v4 }
 0x332   :  { %1188 = vmatpush.msrb.mxu2 %v2249_v6  ;;  %1208 = vmatpush.msrb.mxu3 %v2344_v46 }
 0x333   :  { %1113 = vmatpush.msrb.mxu1 %v2441_v19 }
 0x334   :  { %1189 = vmatpush.msrb.mxu2 %v2254_v10  ;;  %1209 = vmatpush.msrb.mxu3 %v2349_v47 }
 0x335   :  { %1114 = vmatpush.msrb.mxu1 %v2446_v28 }
 0x336   :  { %1190 = vmatpush.msrb.mxu2 %v2259_v12  ;;  %1210 = vmatpush.msrb.mxu3 %v2354_v48 }
 0x393   :  { %v844_v7 = vpop.f32.mrf.mxu1 }
 0x394   :  { %v887_v15 = vadd.f32 %v844_v7, %v177_v14 }
 0x396   :  { %v1438_v13 = vmul.f32 -1.442695, %v887_v15 }
 0x398   :  { %1499 = vpow2.f32 %v1438_v13 }
 0x399   :  { %v864_v34 = vpop.f32.mrf.mxu2 }
 0x39a   :  { %v907_v59 = vadd.f32 %v864_v34, %v221_v23  ;;  %v884_v2 = vpop.f32.mrf.mxu3 }
 0x39c   :  { %v1439_v9 = vmul.f32 -1.442695, %v907_v59 }
 0x39e   :  { %v1500_v25 = vpop.eup %1499  ;;  %1501 = vpow2.f32 %v1439_v9  ;;  %v2665_v9 = vld [vmem:[#allocation18_spill] sm:$0xff] }
 0x39f   :  { %v891_v28 = vadd.f32 1.0, %v1500_v25  ;;  %v265_v25 = vadd.f32 %v2665_v9, %v2072_v11 }
 0x3a1   :  { %1503 = vrcp.f32 %v891_v28  ;;  %v903_v17 = vand.u32 2147483648, %v891_v28  ;;  %v901_v7 = vand.u32 2147483647, %v891_v28  ;;  %vm897_vm1 = vweird.f32 %v891_v28 }
 0x3a3   :  { %v904_v23 = vor.u32 1.1754944e-38, %v903_v17  ;;  %vm902_vm3 = vcmp.eq.f32.partialorder %v901_v7, 8.507059e+37 }
 0x3a4   :  { %v1502_v12 = vpop.eup %1501 }
 0x3a5   :  { %v911_v47 = vadd.f32 1.0, %v1502_v12  ;;  %v927_v12 = vadd.f32 %v2070_v61, %v884_v2 }
 0x3a7   :  { %v1504_v48 = vpop.eup %1503  ;;  %1505 = vrcp.f32 %v911_v47  ;;  %v921_v6 = vand.u32 2147483647, %v911_v47  ;;  %vm917_vm5 = vweird.f32 %v911_v47 }
 0x3a8   :  { %v893_v10 = vmul.f32 %v1504_v48, %v891_v28  ;;  %vm898_vm0 = vweird.f32 %v1504_v48 }
 0x3a9   :  { %vm899_vm2 = vmor %vm897_vm1, %vm898_vm0  ;;  %vm922_vm7 = vcmp.eq.f32.partialorder %v921_v6, 8.507059e+37  ;;  %v2678_v6 = vld [vmem:[#allocation23_spill] sm:$0xff] }
 0x3aa   :  { %v894_v1 = vsub.f32 1.0, %v893_v10 }
 0x3ac   :  { %v895_v14 = vmul.f32 %v1504_v48, %v894_v1  ;;  %v923_v1 = vand.u32 2147483648, %v911_v47 }
 0x3ad   :  { %v1506_v15 = vpop.eup %1505 }
 0x3ae   :  { %v913_v13 = vmul.f32 %v1506_v15, %v911_v47  ;;  %v896_v63 = vadd.f32 %v1504_v48, %v895_v14  ;;  %vm918_vm4 = vweird.f32 %v1506_v15  ;;  %v924_v28 = vor.u32 1.1754944e-38, %v923_v1 }
 0x3af   :  { %vm919_vm6 = vmor %vm917_vm5, %vm918_vm4 }
 0x3b0   :  { %v914_v34 = vsub.f32 1.0, %v913_v13  ;;  %v900_v59 = vsel %vm899_vm2, %v1504_v48, %v896_v63 }
 0x3b1   :  { %v905_v10 = vsel %vm902_vm3, %v904_v23, %v900_v59 }
 0x3b2   :  { %v915_v19 = vmul.f32 %v1506_v15, %v914_v34  ;;  %v928_v46 = vmul.f32 %v927_v12, %v905_v10  ;;  %v2520_v10 = vld [vmem:[%s2580_s4] ss:$0 sm:$0xff]  ;;  %s1735_s4 = smov [#allocation11]  }
 0x3b3   :  { %s1405_s17 = sshll.u32 %s1735_s4, 4  ;;  %s1406_s17 = int_to_ptr.vmem [resolvable:$true] %s1405_s17 }
 0x3b4   :  { %v916_v4 = vadd.f32 %v1506_v15, %v915_v19  ;;  %v929_v14 = vadd.f32 %v928_v46, %v265_v25 }
 0x3b6   :  { %v920_v17 = vsel %vm919_vm6, %v1506_v15, %v916_v4  ;;  %1507 = vtanh.f32 %v929_v14 }
 0x3b7   :  { %v925_v63 = vsel %vm922_vm7, %v924_v28, %v920_v17  ;;  %v2679_v17 = vld [vmem:[#allocation28_spill] sm:$0xff] }
 0x3b8   :  { %v931_v48 = vsub.f32 1.0, %v925_v63  ;;  %v933_v2 = vmul.f32 %v925_v63, %v2365_v37  ;;  %v268_v63 = vadd.f32 %v2679_v17, %v2072_v11 }
 0x3bc   :  { %v1508_v61 = vpop.eup %1507 }
 0x3bd   :  { %v932_v7 = vmul.f32 %v1508_v61, %v931_v48 }
 0x3bf   :  { %v2459_v13 = vadd.f32 %v933_v2, %v932_v7 }
 0x3c1   :  { %936 = vst [vmem:[#allocation11 + $0x20] sm:$0xff] %v2459_v13  ;;  %959 = vmatmul.f32.vlgmr.msra.gmra.mxu0 %v2459_v13  ;;  %979 = vmatmul.f32.vlgmr.msra.gmra.mxu1 %v2459_v13 }
 0x3c2   :  { %999 = vmatmul.f32.vlgmr.msra.gmra.mxu2 %v2459_v13  ;;  %1215 = vmatpush.msra.mxu0 %v2371_v32 }
 0x3c3   :  { %1291 = vmatpush.msra.mxu1 %v2184_v40  ;;  %1311 = vmatpush.msra.mxu2 %v2279_v24  ;;  %v2666_v40 = vld [vmem:[#allocation17_spill] sm:$0xff] }
 0x3c4   :  { %1216 = vmatpush.msra.mxu0 %v2376_v50 }
 0x3c5   :  { %1292 = vmatpush.msra.mxu1 %v2189_v51  ;;  %1312 = vmatpush.msra.mxu2 %v2284_v29  ;;  %v2667_v51 = vld [vmem:[#allocation34_spill] sm:$0xff] }
 0x3c6   :  { %1217 = vmatpush.msra.mxu0 %v2381_v22 }
 0x3c7   :  { %1293 = vmatpush.msra.mxu1 %v2194_v18  ;;  %1313 = vmatpush.msra.mxu2 %v2289_v55  ;;  %v2668_v18 = vld [vmem:[#allocation37_spill] sm:$0xff] }
 0x3c8   :  { %1218 = vmatpush.msra.mxu0 %v2386_v16 }
 0x3c9   :  { %1294 = vmatpush.msra.mxu1 %v2199_v21  ;;  %1314 = vmatpush.msra.mxu2 %v2294_v27  ;;  %v2669_v21 = vld [vmem:[#allocation40_spill] sm:$0xff] }
 0x3ca   :  { %1219 = vmatpush.msra.mxu0 %v2391_v5 }
 0x3cb   :  { %1295 = vmatpush.msra.mxu1 %v2204_v42  ;;  %1315 = vmatpush.msra.mxu2 %v2299_v30  ;;  %v2670_v42 = vld [vmem:[#allocation35_spill] sm:$0xff] }
 0x3cc   :  { %1220 = vmatpush.msra.mxu0 %v2396_v26 }
 0x3cd   :  { %1296 = vmatpush.msra.mxu1 %v2209_v45  ;;  %1316 = vmatpush.msra.mxu2 %v2304_v33  ;;  %v2671_v45 = vld [vmem:[#allocation38_spill] sm:$0xff] }
 0x3ce   :  { %1221 = vmatpush.msra.mxu0 %v2401_v52 }
 0x3cf   :  { %1297 = vmatpush.msra.mxu1 %v2214_v49  ;;  %1317 = vmatpush.msra.mxu2 %v2309_v35  ;;  %v2672_v49 = vld [vmem:[#allocation41_spill] sm:$0xff] }
 0x3d0   :  { %1222 = vmatpush.msra.mxu0 %v2406_v57 }
 0x3d1   :  { %1298 = vmatpush.msra.mxu1 %v2219_v53  ;;  %1318 = vmatpush.msra.mxu2 %v2314_v36  ;;  %v2673_v53 = vld [vmem:[#allocation36_spill] sm:$0xff] }
 0x3d2   :  { %1223 = vmatpush.msra.mxu0 %v2411_v8 }
 0x3d3   :  { %1299 = vmatpush.msra.mxu1 %v2224_v56  ;;  %1319 = vmatpush.msra.mxu2 %v2319_v38  ;;  %v2674_v56 = vld [vmem:[#allocation39_spill] sm:$0xff] }
 0x3d4   :  { %1224 = vmatpush.msra.mxu0 %v2416_v31 }
 0x3d5   :  { %1300 = vmatpush.msra.mxu1 %v2229_v58  ;;  %1320 = vmatpush.msra.mxu2 %v2324_v39  ;;  %v2675_v58 = vld [vmem:[#allocation25_spill] sm:$0xff] }
 0x3d6   :  { %1225 = vmatpush.msra.mxu0 %v2421_v20 }
 0x3d7   :  { %1301 = vmatpush.msra.mxu1 %v2234_v60  ;;  %1321 = vmatpush.msra.mxu2 %v2329_v41  ;;  %v2676_v60 = vld [vmem:[#allocation19_spill] sm:$0xff] }
 0x3d8   :  { %1226 = vmatpush.msra.mxu0 %v2426_v54 }
 0x3d9   :  { %1302 = vmatpush.msra.mxu1 %v2239_v62  ;;  %1322 = vmatpush.msra.mxu2 %v2334_v43  ;;  %v180_v62 = vadd.f32 %v2676_v60, %v2675_v58 }
 0x3da   :  { %1227 = vmatpush.msra.mxu0 %v2431_v0 }
 0x3db   :  { %1303 = vmatpush.msra.mxu1 %v2244_v3  ;;  %1323 = vmatpush.msra.mxu2 %v2339_v44  ;;  %v2677_v3 = vld [vmem:[#allocation26_spill] sm:$0xff] }
 0x3dc   :  { %1228 = vmatpush.msra.mxu0 %v2666_v40  ;;  %v224_v24 = vadd.f32 %v2678_v6, %v2677_v3 }
 0x3dd   :  { %1304 = vmatpush.msra.mxu1 %v2667_v51  ;;  %1324 = vmatpush.msra.mxu2 %v2668_v18 }
 0x3de   :  { %1229 = vmatpush.msra.mxu0 %v2669_v21 }
 0x3df   :  { %1305 = vmatpush.msra.mxu1 %v2670_v42  ;;  %1325 = vmatpush.msra.mxu2 %v2671_v45 }
 0x3e0   :  { %1230 = vmatpush.msra.mxu0 %v2672_v49 }
 0x3e1   :  { %1306 = vmatpush.msra.mxu1 %v2673_v53  ;;  %1326 = vmatpush.msra.mxu2 %v2674_v56 }
 0x43e   :  { %v960_v29 = vpop.f32.mrf.mxu0  ;;  %v980_v55 = vpop.f32.mrf.mxu1 }
 0x43f   :  { %v1003_v27 = vadd.f32 %v960_v29, %v180_v62  ;;  %v1023_v30 = vadd.f32 %v980_v55, %v224_v24 }
 0x441   :  { %v1440_v33 = vmul.f32 -1.442695, %v1003_v27  ;;  %v1441_v35 = vmul.f32 -1.442695, %v1023_v30 }
 0x443   :  { %1509 = vpow2.f32 %v1440_v33 }
 0x444   :  { %1511 = vpow2.f32 %v1441_v35 }
 0x445   :  { %v1000_v59 = vpop.f32.mrf.mxu2 }
 0x446   :  { %v1043_v1 = vadd.f32 %v2520_v10, %v1000_v59 }
 0x449   :  { %v1510_v36 = vpop.eup %1509 }
 0x44a   :  { %v1512_v38 = vpop.eup %1511  ;;  %v1007_v39 = vadd.f32 1.0, %v1510_v36 }
 0x44b   :  { %v1027_v41 = vadd.f32 1.0, %v1512_v38 }
 0x44c   :  { %1513 = vrcp.f32 %v1007_v39  ;;  %v1019_v19 = vand.u32 2147483648, %v1007_v39  ;;  %v1017_v23 = vand.u32 2147483647, %v1007_v39  ;;  %vm1013_vm9 = vweird.f32 %v1007_v39 }
 0x44d   :  { %1515 = vrcp.f32 %v1027_v41  ;;  %v1039_v48 = vand.u32 2147483648, %v1027_v41  ;;  %vm1033_vm13 = vweird.f32 %v1027_v41  ;;  %v1037_v7 = vand.u32 2147483647, %v1027_v41 }
 0x44e   :  { %v1020_v9 = vor.u32 1.1754944e-38, %v1019_v19  ;;  %vm1018_vm11 = vcmp.eq.f32.partialorder %v1017_v23, 8.507059e+37 }
 0x44f   :  { %v1040_v18 = vor.u32 1.1754944e-38, %v1039_v48  ;;  %vm1038_vm15 = vcmp.eq.f32.partialorder %v1037_v7, 8.507059e+37 }
 0x452   :  { %v1514_v43 = vpop.eup %1513 }
 0x453   :  { %v1516_v44 = vpop.eup %1515  ;;  %v1009_v46 = vmul.f32 %v1514_v43, %v1007_v39  ;;  %vm1014_vm8 = vweird.f32 %v1514_v43 }
 0x454   :  { %v1029_v47 = vmul.f32 %v1516_v44, %v1027_v41  ;;  %vm1015_vm10 = vmor %vm1013_vm9, %vm1014_vm8  ;;  %vm1034_vm12 = vweird.f32 %v1516_v44 }
 0x455   :  { %v1010_v37 = vsub.f32 1.0, %v1009_v46  ;;  %vm1035_vm14 = vmor %vm1033_vm13, %vm1034_vm12  ;;  %v2682_v46 = vld [vmem:[#allocation31_spill] sm:$0xff] }
 0x456   :  { %v1030_v4 = vsub.f32 1.0, %v1029_v47  ;;  %v271_v47 = vadd.f32 %v2682_v46, %v2072_v11 }
 0x457   :  { %v1011_v15 = vmul.f32 %v1514_v43, %v1010_v37 }
 0x458   :  { %v1031_v34 = vmul.f32 %v1516_v44, %v1030_v4 }
 0x459   :  { %v1012_v12 = vadd.f32 %v1514_v43, %v1011_v15 }
 0x45a   :  { %v1032_v14 = vadd.f32 %v1516_v44, %v1031_v34 }
 0x45b   :  { %v1016_v25 = vsel %vm1015_vm10, %v1514_v43, %v1012_v12 }
 0x45c   :  { %v1021_v28 = vsel %vm1018_vm11, %v1020_v9, %v1016_v25  ;;  %v1036_v51 = vsel %vm1035_vm14, %v1516_v44, %v1032_v14 }
 0x45d   :  { %v1044_v61 = vmul.f32 %v1043_v1, %v1021_v28  ;;  %v1041_v42 = vsel %vm1038_vm15, %v1040_v18, %v1036_v51  ;;  %v2683_v28 = vld [vmem:[#allocation21_spill] sm:$0xff] }
 0x45e   :  { %v1047_v45 = vsub.f32 1.0, %v1041_v42  ;;  %v1049_v60 = vmul.f32 %v1041_v42, %v2459_v13  ;;  %v186_v17 = vadd.f32 %v2683_v28, %v2675_v58 }
 0x45f   :  { %v1045_v2 = vadd.f32 %v1044_v61, %v268_v63  ;;  %v2684_v63 = vld [vmem:[#allocation27_spill] sm:$0xff] }
 0x460   :  { %v230_v48 = vadd.f32 %v2684_v63, %v2677_v3 }
 0x461   :  { %1517 = vtanh.f32 %v1045_v2 }
 0x467   :  { %v1518_v53 = vpop.eup %1517 }
 0x468   :  { %v1048_v56 = vmul.f32 %v1518_v53, %v1047_v45 }
 0x46a   :  { %v2526_v62 = vadd.f32 %v1049_v60, %v1048_v56 }
 0x46c   :  { %1052 = vst [vmem:[#allocation11 + $0x28] sm:$0xff] %v2526_v62  ;;  %1075 = vmatmul.f32.vlgmr.msra.gmra.mxu3 %v2526_v62  ;;  %1095 = vmatmul.f32.vlgmr.msrb.gmra.mxu0 %v2526_v62 }
 0x46d   :  { %1115 = vmatmul.f32.vlgmr.msrb.gmra.mxu1 %v2526_v62  ;;  %1331 = vmatpush.msra.mxu3 %v2371_v32  ;;  %v2680_v32 = vld [vmem:[#allocation24_spill] sm:$0xff] }
 0x46f   :  { %1332 = vmatpush.msra.mxu3 %v2376_v50  ;;  %v227_v50 = vadd.f32 %v2680_v32, %v2677_v3 }
 0x471   :  { %1333 = vmatpush.msra.mxu3 %v2381_v22 }
 0x473   :  { %1334 = vmatpush.msra.mxu3 %v2386_v16 }
 0x475   :  { %1335 = vmatpush.msra.mxu3 %v2391_v5 }
 0x477   :  { %1336 = vmatpush.msra.mxu3 %v2396_v26  ;;  %v2681_v26 = vld [vmem:[#allocation20_spill] sm:$0xff] }
 0x479   :  { %1337 = vmatpush.msra.mxu3 %v2401_v52  ;;  %v183_v52 = vadd.f32 %v2681_v26, %v2675_v58 }
 0x47b   :  { %1338 = vmatpush.msra.mxu3 %v2406_v57 }
 0x47d   :  { %1339 = vmatpush.msra.mxu3 %v2411_v8 }
 0x47f   :  { %1340 = vmatpush.msra.mxu3 %v2416_v31 }
 0x481   :  { %1341 = vmatpush.msra.mxu3 %v2421_v20 }
 0x483   :  { %1342 = vmatpush.msra.mxu3 %v2426_v54 }
 0x485   :  { %1343 = vmatpush.msra.mxu3 %v2431_v0 }
 0x487   :  { %1344 = vmatpush.msra.mxu3 %v2666_v40 }
 0x489   :  { %1345 = vmatpush.msra.mxu3 %v2669_v21 }
 0x48b   :  { %1346 = vmatpush.msra.mxu3 %v2672_v49 }
 0x4e9   :  { %v1096_v22 = vpop.f32.mrf.mxu0 }
 0x4ea   :  { %v1139_v16 = vadd.f32 %v1096_v22, %v227_v50  ;;  %v1116_v35 = vpop.f32.mrf.mxu1 }
 0x4eb   :  { %v1159_v39 = vadd.f32 %v2520_v10, %v1116_v35 }
 0x4ec   :  { %v1443_v5 = vmul.f32 -1.442695, %v1139_v16 }
 0x4ee   :  { %1519 = vpow2.f32 %v1443_v5 }
 0x4ef   :  { %v1076_v57 = vpop.f32.mrf.mxu3 }
 0x4f0   :  { %v1119_v8 = vadd.f32 %v1076_v57, %v183_v52 }
 0x4f2   :  { %v1442_v31 = vmul.f32 -1.442695, %v1119_v8 }
 0x4f4   :  { %v1520_v20 = vpop.eup %1519  ;;  %1521 = vpow2.f32 %v1442_v31 }
 0x4f5   :  { %v1143_v54 = vadd.f32 1.0, %v1520_v20 }
 0x4f7   :  { %1523 = vrcp.f32 %v1143_v54  ;;  %v1155_v37 = vand.u32 2147483648, %v1143_v54  ;;  %vm1149_vm5 = vweird.f32 %v1143_v54  ;;  %v1153_v19 = vand.u32 2147483647, %v1143_v54 }
 0x4f9   :  { %v1156_v34 = vor.u32 1.1754944e-38, %v1155_v37  ;;  %vm1154_vm7 = vcmp.eq.f32.partialorder %v1153_v19, 8.507059e+37  ;;  %v2687_v19 = vld [vmem:[#allocation30_spill] sm:$0xff] }
 0x4fa   :  { %v1522_v0 = vpop.eup %1521 }
 0x4fb   :  { %v1123_v13 = vadd.f32 1.0, %v1522_v0 }
 0x4fd   :  { %1525 = vrcp.f32 %v1123_v13  ;;  %v1524_v40 = vpop.eup %1523  ;;  %v1135_v55 = vand.u32 2147483648, %v1123_v13  ;;  %v1133_v30 = vand.u32 2147483647, %v1123_v13  ;;  %vm1129_vm1 = vweird.f32 %v1123_v13 }
 0x4fe   :  { %v1145_v21 = vmul.f32 %v1524_v40, %v1143_v54  ;;  %vm1150_vm4 = vweird.f32 %v1524_v40 }
 0x4ff   :  { %v1136_v38 = vor.u32 1.1754944e-38, %v1135_v55  ;;  %vm1134_vm3 = vcmp.eq.f32.partialorder %v1133_v30, 8.507059e+37  ;;  %vm1151_vm6 = vmor %vm1149_vm5, %vm1150_vm4 }
 0x500   :  { %v1146_v24 = vsub.f32 1.0, %v1145_v21 }
 0x502   :  { %v1147_v33 = vmul.f32 %v1524_v40, %v1146_v24 }
 0x503   :  { %v1526_v49 = vpop.eup %1525 }
 0x504   :  { %v1125_v6 = vmul.f32 %v1526_v49, %v1123_v13  ;;  %vm1130_vm0 = vweird.f32 %v1526_v49  ;;  %v1148_v43 = vadd.f32 %v1524_v40, %v1147_v33 }
 0x505   :  { %vm1131_vm2 = vmor %vm1129_vm1, %vm1130_vm0 }
 0x506   :  { %v1126_v29 = vsub.f32 1.0, %v1125_v6  ;;  %v1152_v23 = vsel %vm1151_vm6, %v1524_v40, %v1148_v43 }
 0x507   :  { %v1157_v59 = vsel %vm1154_vm7, %v1156_v34, %v1152_v23 }
 0x508   :  { %v1127_v27 = vmul.f32 %v1526_v49, %v1126_v29  ;;  %v1163_v12 = vsub.f32 1.0, %v1157_v59  ;;  %v1165_v1 = vmul.f32 %v1157_v59, %v2526_v62 }
 0x50a   :  { %v1128_v36 = vadd.f32 %v1526_v49, %v1127_v27 }
 0x50c   :  { %v1132_v41 = vsel %vm1131_vm2, %v1526_v49, %v1128_v36  ;;  %v2685_v49 = vld [vmem:[#allocation32_spill] sm:$0xff] }
 0x50d   :  { %v1137_v44 = vsel %vm1134_vm3, %v1136_v38, %v1132_v41  ;;  %v274_v6 = vadd.f32 %v2685_v49, %v2072_v11 }
 0x50e   :  { %v1160_v4 = vmul.f32 %v1159_v39, %v1137_v44  ;;  %v2686_v44 = vld [vmem:[#allocation29_spill] sm:$0xff] }
 0x50f   :  { %v189_v46 = vadd.f32 %v2686_v44, %v2675_v58 }
 0x510   :  { %v1161_v15 = vadd.f32 %v1160_v4, %v271_v47 }
 0x512   :  { %1527 = vtanh.f32 %v1161_v15  ;;  %v233_v15 = vadd.f32 %v2687_v19, %v2677_v3 }
 0x518   :  { %v1528_v9 = vpop.eup %1527 }
 0x519   :  { %v1164_v25 = vmul.f32 %v1528_v9, %v1163_v12 }
 0x51b   :  { %v1166_v14 = vadd.f32 %v1165_v1, %v1164_v25 }
 0x51d   :  { %1168 = vst [vmem:[#allocation11 + $0x30] sm:$0xff] %v1166_v14  ;;  %1191 = vmatmul.f32.vlgmr.msrb.gmra.mxu2 %v1166_v14  ;;  %1211 = vmatmul.f32.vlgmr.msrb.gmra.mxu3 %v1166_v14 }
 0x51e   :  { %1231 = vmatmul.f32.vlgmr.msra.gmra.mxu0 %v1166_v14 }
 0x59b   :  { %v1232_v8 = vpop.f32.mrf.mxu0 }
 0x59c   :  { %v1275_v0 = vadd.f32 %v2520_v10, %v1232_v8 }
 0x5a0   :  { %v1192_v61 = vpop.f32.mrf.mxu2  ;;  %v1212_v7 = vpop.f32.mrf.mxu3 }
 0x5a1   :  { %v1235_v2 = vadd.f32 %v1192_v61, %v186_v17  ;;  %v1255_v51 = vadd.f32 %v1212_v7, %v230_v48 }
 0x5a3   :  { %v1444_v18 = vmul.f32 -1.442695, %v1235_v2  ;;  %v1445_v42 = vmul.f32 -1.442695, %v1255_v51 }
 0x5a5   :  { %1529 = vpow2.f32 %v1444_v18 }
 0x5a6   :  { %1531 = vpow2.f32 %v1445_v42 }
 0x5ab   :  { %v1530_v45 = vpop.eup %1529 }
 0x5ac   :  { %v1532_v53 = vpop.eup %1531  ;;  %v1239_v56 = vadd.f32 1.0, %v1530_v45 }
 0x5ad   :  { %v1259_v60 = vadd.f32 1.0, %v1532_v53  ;;  %v2688_v53 = vld [vmem:[#allocation33_spill] sm:$0xff] }
 0x5ae   :  { %1533 = vrcp.f32 %v1239_v56  ;;  %v1251_v5 = vand.u32 2147483648, %v1239_v56  ;;  %v1249_v57 = vand.u32 2147483647, %v1239_v56  ;;  %vm1245_vm9 = vweird.f32 %v1239_v56 }
 0x5af   :  { %1535 = vrcp.f32 %v1259_v60  ;;  %v1271_v29 = vand.u32 2147483648, %v1259_v60  ;;  %vm1265_vm13 = vweird.f32 %v1259_v60  ;;  %v1269_v55 = vand.u32 2147483647, %v1259_v60 }
 0x5b0   :  { %v1252_v54 = vor.u32 1.1754944e-38, %v1251_v5  ;;  %vm1250_vm11 = vcmp.eq.f32.partialorder %v1249_v57, 8.507059e+37 }
 0x5b1   :  { %v1272_v33 = vor.u32 1.1754944e-38, %v1271_v29  ;;  %vm1270_vm15 = vcmp.eq.f32.partialorder %v1269_v55, 8.507059e+37 }
 0x5b4   :  { %v1534_v62 = vpop.eup %1533 }
 0x5b5   :  { %v1536_v32 = vpop.eup %1535  ;;  %v1241_v50 = vmul.f32 %v1534_v62, %v1239_v56  ;;  %vm1246_vm8 = vweird.f32 %v1534_v62  ;;  %v277_v56 = vadd.f32 %v2688_v53, %v2072_v11 }
 0x5b6   :  { %v1261_v22 = vmul.f32 %v1536_v32, %v1259_v60  ;;  %vm1247_vm10 = vmor %vm1245_vm9, %vm1246_vm8  ;;  %vm1266_vm12 = vweird.f32 %v1536_v32 }
 0x5b7   :  { %v1242_v16 = vsub.f32 1.0, %v1241_v50  ;;  %vm1267_vm14 = vmor %vm1265_vm13, %vm1266_vm12 }
 0x5b8   :  { %v1262_v26 = vsub.f32 1.0, %v1261_v22 }
 0x5b9   :  { %v1243_v52 = vmul.f32 %v1534_v62, %v1242_v16 }
 0x5ba   :  { %v1263_v31 = vmul.f32 %v1536_v32, %v1262_v26 }
 0x5bb   :  { %v1244_v20 = vadd.f32 %v1534_v62, %v1243_v52 }
 0x5bc   :  { %v1264_v21 = vadd.f32 %v1536_v32, %v1263_v31 }
 0x5bd   :  { %v1248_v13 = vsel %vm1247_vm10, %v1534_v62, %v1244_v20 }
 0x5be   :  { %v1253_v40 = vsel %vm1250_vm11, %v1252_v54, %v1248_v13  ;;  %v1268_v30 = vsel %vm1267_vm14, %v1536_v32, %v1264_v21 }
 0x5bf   :  { %v1276_v24 = vmul.f32 %v1275_v0, %v1253_v40  ;;  %v1273_v35 = vsel %vm1270_vm15, %v1272_v33, %v1268_v30 }
 0x5c0   :  { %v1279_v36 = vsub.f32 1.0, %v1273_v35  ;;  %v1281_v41 = vmul.f32 %v1273_v35, %v1166_v14 }
 0x5c1   :  { %v1277_v27 = vadd.f32 %v1276_v24, %v274_v6 }
 0x5c3   :  { %1537 = vtanh.f32 %v1277_v27 }
 0x5c9   :  { %v1538_v38 = vpop.eup %1537 }
 0x5ca   :  { %v1280_v39 = vmul.f32 %v1538_v38, %v1279_v36 }
 0x5cc   :  { %v1282_v43 = vadd.f32 %v1281_v41, %v1280_v39 }
 0x5ce   :  { %1284 = vst [vmem:[#allocation11 + $0x38] sm:$0xff] %v1282_v43  ;;  %1307 = vmatmul.f32.vlgmr.msra.gmra.mxu1 %v1282_v43  ;;  %1327 = vmatmul.f32.vlgmr.msra.gmra.mxu2 %v1282_v43 }
 0x5cf   :  { %1347 = vmatmul.f32.vlgmr.msra.gmra.mxu3 %v1282_v43 }
 0x64b   :  { %v1308_v47 = vpop.f32.mrf.mxu1 }
 0x64c   :  { %v1351_v37 = vadd.f32 %v1308_v47, %v189_v46 }
 0x64e   :  { %v1446_v4 = vmul.f32 -1.442695, %v1351_v37 }
 0x650   :  { %1539 = vpow2.f32 %v1446_v4 }
 0x651   :  { %v1328_v23 = vpop.f32.mrf.mxu2 }
 0x652   :  { %v1371_v34 = vadd.f32 %v1328_v23, %v233_v15  ;;  %v1348_v3 = vpop.f32.mrf.mxu3 }
 0x653   :  { %v1391_v45 = vadd.f32 %v2520_v10, %v1348_v3 }
 0x654   :  { %v1447_v59 = vmul.f32 -1.442695, %v1371_v34 }
 0x656   :  { %v1540_v12 = vpop.eup %1539  ;;  %1541 = vpow2.f32 %v1447_v59 }
 0x657   :  { %v1355_v9 = vadd.f32 1.0, %v1540_v12 }
 0x659   :  { %1543 = vrcp.f32 %v1355_v9  ;;  %v1367_v17 = vand.u32 2147483648, %v1355_v9  ;;  %v1365_v48 = vand.u32 2147483647, %v1355_v9  ;;  %vm1361_vm1 = vweird.f32 %v1355_v9 }
 0x65b   :  { %v1368_v51 = vor.u32 1.1754944e-38, %v1367_v17  ;;  %vm1366_vm3 = vcmp.eq.f32.partialorder %v1365_v48, 8.507059e+37 }
 0x65c   :  { %v1542_v25 = vpop.eup %1541 }
 0x65d   :  { %v1375_v1 = vadd.f32 1.0, %v1542_v25 }
 0x65f   :  { %v1544_v14 = vpop.eup %1543  ;;  %1545 = vrcp.f32 %v1375_v1  ;;  %v1387_v32 = vand.u32 2147483648, %v1375_v1  ;;  %v1385_v22 = vand.u32 2147483647, %v1375_v1  ;;  %vm1381_vm5 = vweird.f32 %v1375_v1 }
 0x660   :  { %v1357_v28 = vmul.f32 %v1544_v14, %v1355_v9  ;;  %vm1362_vm0 = vweird.f32 %v1544_v14 }
 0x661   :  { %vm1363_vm2 = vmor %vm1361_vm1, %vm1362_vm0  ;;  %v1388_v26 = vor.u32 1.1754944e-38, %v1387_v32  ;;  %vm1386_vm7 = vcmp.eq.f32.partialorder %v1385_v22, 8.507059e+37 }
 0x662   :  { %v1358_v58 = vsub.f32 1.0, %v1357_v28 }
 0x664   :  { %v1359_v63 = vmul.f32 %v1544_v14, %v1358_v58 }
 0x665   :  { %v1546_v61 = vpop.eup %1545 }
 0x666   :  { %v1377_v7 = vmul.f32 %v1546_v61, %v1375_v1  ;;  %v1360_v2 = vadd.f32 %v1544_v14, %v1359_v63  ;;  %vm1382_vm4 = vweird.f32 %v1546_v61 }
 0x667   :  { %vm1383_vm6 = vmor %vm1381_vm5, %vm1382_vm4 }
 0x668   :  { %v1378_v18 = vsub.f32 1.0, %v1377_v7  ;;  %v1364_v42 = vsel %vm1363_vm2, %v1544_v14, %v1360_v2 }
 0x669   :  { %v1369_v60 = vsel %vm1366_vm3, %v1368_v51, %v1364_v42 }
 0x66a   :  { %v1379_v62 = vmul.f32 %v1546_v61, %v1378_v18  ;;  %v1392_v50 = vmul.f32 %v1391_v45, %v1369_v60 }
 0x66c   :  { %v1380_v16 = vadd.f32 %v1546_v61, %v1379_v62  ;;  %v1393_v5 = vadd.f32 %v1392_v50, %v277_v56 }
 0x66e   :  { %v1384_v52 = vsel %vm1383_vm6, %v1546_v61, %v1380_v16  ;;  %1547 = vtanh.f32 %v1393_v5 }
 0x66f   :  { %v1389_v57 = vsel %vm1386_vm7, %v1388_v26, %v1384_v52 }
 0x670   :  { %v1395_v8 = vsub.f32 1.0, %v1389_v57  ;;  %v1397_v31 = vmul.f32 %v1389_v57, %v1282_v43 }
 0x674   :  { %v1548_v10 = vpop.eup %1547 }
 0x675   :  { %v1396_v11 = vmul.f32 %v1548_v10, %v1395_v8 }
 0x677   :  { %v1398_v20 = vadd.f32 %v1397_v31, %v1396_v11 }
 0x679   :  { %1400 = vst [vmem:[#allocation11 + $0x40] sm:$0xff] %v1398_v20 }
 0x67a   :  { %1413 = dma.vmem_to_hbm [thread:$0]  %s1406_s17, 1152, %s1408_s20, [#allocation5], %s1730_s30, %s1730_s30, %s1731_s6  }
 0x67b   :  { %1724 = dma.done.wait [#allocation5], 1152  }
 0x67c   :  { %1725 = vsyncadd [#allocation5], 4294966144 }
 0x67d   :  { %1418 = vsyncpa [#allocation4], 1 }
 0x67e   :  { %1419 = vsyncpa [#allocation7], 1 }
 0x67f   :  { %1420 = vsyncpa [#allocation10], 1 }
 0x680   :  { %1421 = vsyncpa [#allocation5], 1 }

</bundles_post_ra>
